<compile_context>
chip_gen: v7x
topology: tpu7x:2x2x1
jax: 0.10.0
libtpu: 0.0.40
codegen_flags: <defaults>
</compile_context>

<pallas_src>
import functools

import jax
import jax.numpy as jnp
from jax.experimental import pallas as pl
from jax.experimental.pallas import tpu as pltpu

_VMEM_LIMIT = 48 * 1024 * 1024  # safe on v7x (64 MiB phys) and under v6e/v5e scoped max


def _round_up(v, m):
    return ((v + m - 1) // m) * m


def _pad2(a, rows, cols):
    return jnp.pad(a, ((0, rows - a.shape[0]), (0, cols - a.shape[1])))


# ----------------------------------------------------------------------------
# Pre-pass: per row-tile of N, compute
#   SW = sigmoid(x @ W_support + b_support) @ W_neigh   -> bf16
#   XS = x @ W_self                                     -> f32
# Weights stay VMEM-resident across the grid (index_map returns (0,0)).
# ----------------------------------------------------------------------------
def _prepass_kernel(x_ref, w_sup_ref, b_sup_ref, w_neigh_ref, w_self_ref,
                    sw_ref, xs_ref):
    x = x_ref[...]
    support = jax.nn.sigmoid(
        jnp.dot(x, w_sup_ref[...], preferred_element_type=jnp.float32)
        + b_sup_ref[...]
    )
    sw = jnp.dot(support, w_neigh_ref[...], preferred_element_type=jnp.float32)
    sw_ref[...] = sw.astype(sw_ref.dtype)
    xs_ref[...] = jnp.dot(
        x, w_self_ref[...], preferred_element_type=jnp.float32
    ).astype(xs_ref.dtype)


# ----------------------------------------------------------------------------
# Main pass: tiled reduction  acc(i) = XS(i) + sum_k adj[i,k] @ SW[k]
# Epilogue:  out[i] = relu(acc)
#   * adj arrives in its original dtype (f32 or bf16) and is cast to bf16 per
#     tile for the MXU (no wrapper-side N^2 cast).
#   * mask_k=True handles the ragged reduction edge (columns >= n_valid of the
#     last k tile are garbage from the partial HBM block -> force them to 0).
# ----------------------------------------------------------------------------
def _agg_kernel(adj_ref, sw_ref, xs_ref, o_ref, acc_ref, *,
                n_valid, k_tile, mask_k):
    k = pl.program_id(1)

    @pl.when(k == 0)
    def _():
        # fold x @ W_self into the accumulator init (no epilogue add)
        acc_ref[...] = xs_ref[...]

    adj = adj_ref[...]
    if mask_k:
        col = k * k_tile + jax.lax.broadcasted_iota(jnp.int32, adj.shape, 1)
        adj = jnp.where(col < n_valid, adj, 0)
    acc_ref[...] += jnp.dot(
        adj.astype(jnp.bfloat16), sw_ref[...], preferred_element_type=jnp.float32
    )

    @pl.when(k == pl.num_programs(1) - 1)
    def _():
        o_ref[...] = jnp.maximum(acc_ref[...], 0.0).astype(o_ref.dtype)


def graph_sage_forward(x, adj, w_support, b_support, w_neigh, w_self, *,
                       m_tile=1024, k_tile=2048):
    """GraphSAGE layer forward.

    x:         [N, in_features]  float32
    adj:       [N, N]            float32 (or bf16 if pre-converted by the caller)
    w_support: [in_features, out_features]
    b_support: [1, out_features] (or [out_features])
    w_neigh:   [out_features, out_features]
    w_self:    [in_features, out_features]
    returns:   [N, out_features] float32
    """
    n, in_f = x.shape
    out_f = w_support.shape[1]
    assert adj.shape == (n, n)
    if b_support.ndim == 1:
        b_support = b_support[None, :]

    out_p = _round_up(out_f, 128)

    # ---- tile selection (multiples of 128, clamped to the problem size) ----
    # cap m_tile so there are >=2 row tiles when possible (v7x: 2 TensorCores)
    m_cap = max(128, _round_up(-(-n // 2), 128))
    m_tile = max(128, min(_round_up(int(m_tile), 128), m_cap))
    k_tile = max(128, min(_round_up(int(k_tile), 128), _round_up(n, 128)))

    # auto-shrink to fit the VMEM budget (adj tile is double-buffered)
    adj_bytes = jnp.dtype(adj.dtype).itemsize

    def _vmem_estimate(mt, kt):
        return (2 * mt * kt * adj_bytes          # adj tiles (double-buffered)
                + 2 * kt * out_p * 2             # SW tiles (bf16)
                + 2 * mt * out_p * 4             # XS tiles
                + 2 * mt * out_p * 4             # out tiles
                + mt * out_p * 4)                # acc scratch

    budget = _VMEM_LIMIT - (8 << 20)
    while _vmem_estimate(m_tile, k_tile) > budget and k_tile > 128:
        k_tile = max(128, ((k_tile // 2) // 128) * 128)
    while _vmem_estimate(m_tile, k_tile) > budget and m_tile > 128:
        m_tile = max(128, ((m_tile // 2) // 128) * 128)

    n_pad_m = _round_up(n, m_tile)           # rows covered by the row-tile grid
    n_pad_k = _round_up(n, k_tile)           # rows of SW touched by the k grid
    pre_tile = min(512, _round_up(n, 128))
    n_pre = _round_up(max(n_pad_m, n_pad_k), pre_tile)

    # Only the (tiny) node-feature matrix and the weights get padded; padded x
    # rows are zero so SW/XS padded rows are finite and XS padded rows are zero.
    x_p = _pad2(x.astype(jnp.float32), n_pre, in_f)
    w_sup_p = _pad2(w_support, in_f, out_p)
    b_sup_p = _pad2(b_support, 1, out_p)
    w_neigh_p = _pad2(w_neigh, out_p, out_p)
    w_self_p = _pad2(w_self, in_f, out_p)

    # ---- pre-pass: SW (bf16) and XS (f32), row-tiled ----
    prepass_cost = pl.CostEstimate(
        flops=int(2 * n_pre * in_f * out_p * 2 + 2 * n_pre * out_p * out_p),
        transcendentals=int(n_pre * out_p),
        bytes_accessed=int(
            n_pre * in_f * 4
            + (in_f * out_p + out_p + out_p * out_p + in_f * out_p) * 4
            + n_pre * out_p * (2 + 4)
        ),
    )
    sw, xs = pl.pallas_call(
        _prepass_kernel,
        out_shape=(
            jax.ShapeDtypeStruct((n_pre, out_p), jnp.bfloat16),
            jax.ShapeDtypeStruct((n_pre, out_p), jnp.float32),
        ),
        grid_spec=pltpu.PrefetchScalarGridSpec(
            num_scalar_prefetch=0,
            grid=(n_pre // pre_tile,),
            in_specs=[
                pl.BlockSpec((pre_tile, in_f), lambda i: (i, 0)),
                pl.BlockSpec((in_f, out_p), lambda i: (0, 0)),
                pl.BlockSpec((1, out_p), lambda i: (0, 0)),
                pl.BlockSpec((out_p, out_p), lambda i: (0, 0)),
                pl.BlockSpec((in_f, out_p), lambda i: (0, 0)),
            ],
            out_specs=[
                pl.BlockSpec((pre_tile, out_p), lambda i: (i, 0)),
                pl.BlockSpec((pre_tile, out_p), lambda i: (i, 0)),
            ],
        ),
        compiler_params=pltpu.CompilerParams(
            dimension_semantics=("parallel",),
            vmem_limit_bytes=_VMEM_LIMIT,
        ),
        cost_estimate=prepass_cost,
    )(x_p, w_sup_p, b_sup_p, w_neigh_p, w_self_p)

    # ---- main pass: out = relu(adj @ SW + XS), tiled (row, k) reduction ----
    n_row_tiles = pl.cdiv(n, m_tile)
    n_k_tiles = pl.cdiv(n, k_tile)
    main_cost = pl.CostEstimate(
        flops=int(2 * n_pad_m * n_pad_k * out_p),
        transcendentals=0,
        bytes_accessed=int(
            n * n * adj_bytes                       # adj stream (dominant)
            + n_row_tiles * n_pad_k * out_p * 2     # SW re-read per row tile
            + n_pad_m * out_p * 4                   # XS
            + n_pad_m * out_p * 4                   # out
        ),
    )
    out_padded = pl.pallas_call(
        functools.partial(_agg_kernel, n_valid=n, k_tile=k_tile,
                          mask_k=(n % k_tile != 0)),
        out_shape=jax.ShapeDtypeStruct((n_pad_m, out_p), jnp.float32),
        grid_spec=pltpu.PrefetchScalarGridSpec(
            num_scalar_prefetch=0,
            grid=(n_row_tiles, n_k_tiles),  # reduction (k) axis last
            in_specs=[
                pl.BlockSpec((m_tile, k_tile), lambda i, k: (i, k)),   # adj (unpadded)
                pl.BlockSpec((k_tile, out_p), lambda i, k: (k, 0)),    # SW  (bf16)
                pl.BlockSpec((m_tile, out_p), lambda i, k: (i, 0)),    # XS  (resident over k)
            ],
            out_specs=pl.BlockSpec((m_tile, out_p), lambda i, k: (i, 0)),
            scratch_shapes=[pltpu.VMEM((m_tile, out_p), jnp.float32)],
        ),
        compiler_params=pltpu.CompilerParams(
            dimension_semantics=("parallel", "arbitrary"),
            vmem_limit_bytes=_VMEM_LIMIT,
        ),
        cost_estimate=main_cost,
    )(adj, sw, xs)

    return out_padded[:n, :out_f]


def _xavier_uniform(key, shape, dtype=jnp.float32):
    fan_in, fan_out = shape[0], shape[1]
    limit = (6.0 / (fan_in + fan_out)) ** 0.5
    return jax.random.uniform(key, shape, dtype, minval=-limit, maxval=limit)


def _reference_forward(x, adj, w_support, b_support, w_neigh, w_self):
    support = jax.nn.sigmoid(x @ w_support + b_support)
    output = adj @ support
    return jax.nn.relu(output @ w_neigh + x @ w_self)


if __name__ == "__main__":
    # small shapes consistent with the module: N nodes, in_features -> out_features
    N = 200
    in_features = 16
    out_features = 32

    key = jax.random.PRNGKey(0)
    k_x, k_adj, k_ws, k_bs, k_wn, k_wf = jax.random.split(key, 6)

    x = jax.random.normal(k_x, (N, in_features), jnp.float32)
    # row-normalized dense adjacency (any dense matrix works for mm semantics)
    adj_raw = jax.random.uniform(k_adj, (N, N), jnp.float32)
    adj = adj_raw / jnp.sum(adj_raw, axis=1, keepdims=True)

    w_support = _xavier_uniform(k_ws, (in_features, out_features))
    b_support = _xavier_uniform(k_bs, (1, out_features))
    w_neigh = _xavier_uniform(k_wn, (out_features, out_features))
    w_self = _xavier_uniform(k_wf, (in_features, out_features))

    fwd = jax.jit(graph_sage_forward)
    out = fwd(x, adj, w_support, b_support, w_neigh, w_self)
    out = jax.block_until_ready(out)

    ref = _reference_forward(x, adj, w_support, b_support, w_neigh, w_self)
    assert out.shape == (N, out_features)
    max_err = float(jnp.max(jnp.abs(out - ref)))
    # bf16 adj/SW fed to the MXU (f32 accumulation) -> relaxed tolerance vs f32 ref
    assert jnp.allclose(out, ref, atol=2e-2, rtol=2e-2), (
        f"mismatch vs reference (max abs err {max_err})"
    )

    print("KERNEL_OK")
</pallas_src>

<mosaic_0001>
module attributes {stable_mosaic.version = 11 : i64} {
  func.func @_agg_kernel(%arg0: i32, %arg1: i32, %arg2: memref<128x256xf32, #tpu.memory_space<vmem>>, %arg3: memref<256x128xbf16, #tpu.memory_space<vmem>>, %arg4: memref<128x128xf32, #tpu.memory_space<vmem>>, %arg5: memref<128x128xf32, #tpu.memory_space<vmem>>, %arg6: memref<128x128xf32, #tpu.memory_space<vmem>>) attributes {dimension_semantics = [#tpu.dimension_semantics<parallel>, #tpu.dimension_semantics<arbitrary>], iteration_bounds = array<i64: 2, 1>, scalar_prefetch = 0 : i64, scratch_operands = 1 : i64, tpu.core_type = #tpu.core_type<tc>, window_params = [{transform_indices = @transform_0, window_bounds = array<i64: 128, 256>}, {transform_indices = @transform_1, window_bounds = array<i64: 256, 128>}, {transform_indices = @transform_2, window_bounds = array<i64: 128, 128>}, {transform_indices = @transform_3, window_bounds = array<i64: 128, 128>}]} {
    %c0_i32 = arith.constant 0 : i32
    %0 = arith.cmpi eq, %arg1, %c0_i32 : i32
    %1 = arith.extui %0 : i1 to i32
    %c0_i32_0 = arith.constant 0 : i32
    %2 = arith.cmpi ne, %1, %c0_i32_0 : i32
    scf.if %2 {
      %c0_11 = arith.constant 0 : index
      %c0_12 = arith.constant 0 : index
      %22 = vector.load %arg4[%c0_11, %c0_12] : memref<128x128xf32, #tpu.memory_space<vmem>>, vector<128x128xf32>
      %c0_13 = arith.constant 0 : index
      %c0_14 = arith.constant 0 : index
      %23 = vector.load %arg6[%c0_13, %c0_14] : memref<128x128xf32, #tpu.memory_space<vmem>>, vector<128x128xf32>
      tpu.vector_store %arg6[%c0_13, %c0_14], %22 {strides = array<i32>} : memref<128x128xf32, #tpu.memory_space<vmem>>, vector<128x128xf32>,
    } else {
    }
    %c0 = arith.constant 0 : index
    %c0_1 = arith.constant 0 : index
    %3 = vector.load %arg2[%c0, %c0_1] : memref<128x256xf32, #tpu.memory_space<vmem>>, vector<128x256xf32>
    %c256_i32 = arith.constant 256 : i32
    %4 = arith.muli %arg1, %c256_i32 : i32
    %5 = tpu.iota {dimensions = array<i32: 1>} : vector<128x256xi32>
    %6 = vector.broadcast %4 : i32 to vector<128x256xi32>
    %7 = arith.addi %6, %5 : vector<128x256xi32>
    %c200_i32 = arith.constant 200 : i32
    %8 = vector.broadcast %c200_i32 : i32 to vector<128x256xi32>
    %9 = arith.cmpi slt, %7, %8 : vector<128x256xi32>
    %c0_i32_2 = arith.constant 0 : i32
    %10 = arith.sitofp %c0_i32_2 : i32 to f32
    %11 = vector.broadcast %10 : f32 to vector<128x256xf32>
    %12 = arith.select %9, %3, %11 : vector<128x256xi1>, vector<128x256xf32>
    %c0_3 = arith.constant 0 : index
    %c0_4 = arith.constant 0 : index
    %13 = vector.load %arg6[%c0_3, %c0_4] : memref<128x128xf32, #tpu.memory_space<vmem>>, vector<128x128xf32>
    %14 = arith.truncf %12 : vector<128x256xf32> to vector<128x256xbf16>
    %c0_5 = arith.constant 0 : index
    %c0_6 = arith.constant 0 : index
    %15 = vector.load %arg3[%c0_5, %c0_6] : memref<256x128xbf16, #tpu.memory_space<vmem>>, vector<256x128xbf16>
    %cst = arith.constant dense<0.000000e+00> : vector<128x128xf32>
    %16 = tpu.matmul %14, %15, %cst {dimension_numbers = #tpu.dot_dimension_numbers<[1], [0], [0], [1], [0, 0, 1, 1], [], []>} : vector<128x256xbf16>, vector<256x128xbf16>, vector<128x128xf32> -> vector<128x128xf32>
    %17 = arith.addf %13, %16 : vector<128x128xf32>
    %c0_7 = arith.constant 0 : index
    %c0_8 = arith.constant 0 : index
    %18 = vector.load %arg6[%c0_7, %c0_8] : memref<128x128xf32, #tpu.memory_space<vmem>>, vector<128x128xf32>
    tpu.vector_store %arg6[%c0_7, %c0_8], %17 {strides = array<i32>} : memref<128x128xf32, #tpu.memory_space<vmem>>, vector<128x128xf32>,
    %c0_i32_9 = arith.constant 0 : i32
    %19 = arith.cmpi eq, %arg1, %c0_i32_9 : i32
    %20 = arith.extui %19 : i1 to i32
    %c0_i32_10 = arith.constant 0 : i32
    %21 = arith.cmpi ne, %20, %c0_i32_10 : i32
    scf.if %21 {
      %c0_11 = arith.constant 0 : index
      %c0_12 = arith.constant 0 : index
      %22 = vector.load %arg6[%c0_11, %c0_12] : memref<128x128xf32, #tpu.memory_space<vmem>>, vector<128x128xf32>
      %cst_13 = arith.constant 0.000000e+00 : f32
      %23 = vector.broadcast %cst_13 : f32 to vector<128x128xf32>
      %24 = arith.maximumf %22, %23 : vector<128x128xf32>
      %c0_14 = arith.constant 0 : index
      %c0_15 = arith.constant 0 : index
      %25 = vector.load %arg5[%c0_14, %c0_15] : memref<128x128xf32, #tpu.memory_space<vmem>>, vector<128x128xf32>
      tpu.vector_store %arg5[%c0_14, %c0_15], %24 {strides = array<i32>} : memref<128x128xf32, #tpu.memory_space<vmem>>, vector<128x128xf32>,
    } else {
    }
    return
  }
  func.func @transform_0(%arg0: i32, %arg1: i32) -> (i32, i32) {
    %c0_i32 = arith.constant 0 : i32
    return %arg0, %arg1 : i32, i32
  }
  func.func @transform_1(%arg0: i32, %arg1: i32) -> (i32, i32) {
    %c0_i32 = arith.constant 0 : i32
    %c0_i32_0 = arith.constant 0 : i32
    return %arg1, %c0_i32 : i32, i32
  }
  func.func @transform_2(%arg0: i32, %arg1: i32) -> (i32, i32) {
    %c0_i32 = arith.constant 0 : i32
    %c0_i32_0 = arith.constant 0 : i32
    return %arg0, %c0_i32 : i32, i32
  }
  func.func @transform_3(%arg0: i32, %arg1: i32) -> (i32, i32) {
    %c0_i32 = arith.constant 0 : i32
    %c0_i32_0 = arith.constant 0 : i32
    return %arg0, %c0_i32 : i32, i32
  }
}

module attributes {stable_mosaic.version = 11 : i64} {
  func.func @_prepass_kernel(%arg0: i32, %arg1: memref<256x16xf32, #tpu.memory_space<vmem>>, %arg2: memref<16x128xf32, #tpu.memory_space<vmem>>, %arg3: memref<1x128xf32, #tpu.memory_space<vmem>>, %arg4: memref<128x128xf32, #tpu.memory_space<vmem>>, %arg5: memref<16x128xf32, #tpu.memory_space<vmem>>, %arg6: memref<256x128xbf16, #tpu.memory_space<vmem>>, %arg7: memref<256x128xf32, #tpu.memory_space<vmem>>) attributes {dimension_semantics = [#tpu.dimension_semantics<parallel>], iteration_bounds = array<i64: 1>, scalar_prefetch = 0 : i64, scratch_operands = 0 : i64, tpu.core_type = #tpu.core_type<tc>, window_params = [{transform_indices = @transform_0, window_bounds = array<i64: 256, 16>}, {pipeline_mode = #tpu.pipeline_mode<synchronous>, transform_indices = @transform_1, window_bounds = array<i64: 16, 128>}, {pipeline_mode = #tpu.pipeline_mode<synchronous>, transform_indices = @transform_2, window_bounds = array<i64: 1, 128>}, {pipeline_mode = #tpu.pipeline_mode<synchronous>, transform_indices = @transform_3, window_bounds = array<i64: 128, 128>}, {pipeline_mode = #tpu.pipeline_mode<synchronous>, transform_indices = @transform_4, window_bounds = array<i64: 16, 128>}, {transform_indices = @transform_5, window_bounds = array<i64: 256, 128>}, {transform_indices = @transform_6, window_bounds = array<i64: 256, 128>}]} {
    %c0 = arith.constant 0 : index
    %c0_0 = arith.constant 0 : index
    %0 = vector.load %arg1[%c0, %c0_0] : memref<256x16xf32, #tpu.memory_space<vmem>>, vector<256x16xf32>
    %c0_1 = arith.constant 0 : index
    %c0_2 = arith.constant 0 : index
    %1 = vector.load %arg2[%c0_1, %c0_2] : memref<16x128xf32, #tpu.memory_space<vmem>>, vector<16x128xf32>
    %cst = arith.constant dense<0.000000e+00> : vector<256x128xf32>
    %2 = tpu.matmul %0, %1, %cst {dimension_numbers = #tpu.dot_dimension_numbers<[1], [0], [0], [1], [0, 0, 1, 1], [], []>} : vector<256x16xf32>, vector<16x128xf32>, vector<256x128xf32> -> vector<256x128xf32>
    %c0_3 = arith.constant 0 : index
    %c0_4 = arith.constant 0 : index
    %3 = vector.load %arg3[%c0_3, %c0_4] : memref<1x128xf32, #tpu.memory_space<vmem>>, vector<1x128xf32>
    %4 = vector.broadcast %3 : vector<1x128xf32> to vector<256x128xf32>
    %5 = arith.addf %2, %4 : vector<256x128xf32>
    %6 = arith.negf %5 : vector<256x128xf32>
    %7 = math.exp %6 : vector<256x128xf32>
    %cst_5 = arith.constant 1.000000e+00 : f32
    %8 = vector.broadcast %cst_5 : f32 to vector<256x128xf32>
    %9 = arith.addf %8, %7 : vector<256x128xf32>
    %10 = arith.divf %8, %9 : vector<256x128xf32>
    %c0_6 = arith.constant 0 : index
    %c0_7 = arith.constant 0 : index
    %11 = vector.load %arg4[%c0_6, %c0_7] : memref<128x128xf32, #tpu.memory_space<vmem>>, vector<128x128xf32>
    %cst_8 = arith.constant dense<0.000000e+00> : vector<256x128xf32>
    %12 = tpu.matmul %10, %11, %cst_8 {dimension_numbers = #tpu.dot_dimension_numbers<[1], [0], [0], [1], [0, 0, 1, 1], [], []>} : vector<256x128xf32>, vector<128x128xf32>, vector<256x128xf32> -> vector<256x128xf32>
    %13 = arith.truncf %12 : vector<256x128xf32> to vector<256x128xbf16>
    %c0_9 = arith.constant 0 : index
    %c0_10 = arith.constant 0 : index
    %14 = vector.load %arg6[%c0_9, %c0_10] : memref<256x128xbf16, #tpu.memory_space<vmem>>, vector<256x128xbf16>
    tpu.vector_store %arg6[%c0_9, %c0_10], %13 {strides = array<i32>} : memref<256x128xbf16, #tpu.memory_space<vmem>>, vector<256x128xbf16>,
    %c0_11 = arith.constant 0 : index
    %c0_12 = arith.constant 0 : index
    %15 = vector.load %arg5[%c0_11, %c0_12] : memref<16x128xf32, #tpu.memory_space<vmem>>, vector<16x128xf32>
    %cst_13 = arith.constant dense<0.000000e+00> : vector<256x128xf32>
    %16 = tpu.matmul %0, %15, %cst_13 {dimension_numbers = #tpu.dot_dimension_numbers<[1], [0], [0], [1], [0, 0, 1, 1], [], []>} : vector<256x16xf32>, vector<16x128xf32>, vector<256x128xf32> -> vector<256x128xf32>
    %c0_14 = arith.constant 0 : index
    %c0_15 = arith.constant 0 : index
    %17 = vector.load %arg7[%c0_14, %c0_15] : memref<256x128xf32, #tpu.memory_space<vmem>>, vector<256x128xf32>
    tpu.vector_store %arg7[%c0_14, %c0_15], %16 {strides = array<i32>} : memref<256x128xf32, #tpu.memory_space<vmem>>, vector<256x128xf32>,
    return
  }
  func.func @transform_0(%arg0: i32) -> (i32, i32) {
    %c0_i32 = arith.constant 0 : i32
    %c0_i32_0 = arith.constant 0 : i32
    return %arg0, %c0_i32 : i32, i32
  }
  func.func @transform_1(%arg0: i32) -> (i32, i32) {
    %c0_i32 = arith.constant 0 : i32
    %c0_i32_0 = arith.constant 0 : i32
    %c0_i32_1 = arith.constant 0 : i32
    return %c0_i32, %c0_i32_0 : i32, i32
  }
  func.func @transform_2(%arg0: i32) -> (i32, i32) {
    %c0_i32 = arith.constant 0 : i32
    %c0_i32_0 = arith.constant 0 : i32
    %c0_i32_1 = arith.constant 0 : i32
    return %c0_i32, %c0_i32_0 : i32, i32
  }
  func.func @transform_3(%arg0: i32) -> (i32, i32) {
    %c0_i32 = arith.constant 0 : i32
    %c0_i32_0 = arith.constant 0 : i32
    %c0_i32_1 = arith.constant 0 : i32
    return %c0_i32, %c0_i32_0 : i32, i32
  }
  func.func @transform_4(%arg0: i32) -> (i32, i32) {
    %c0_i32 = arith.constant 0 : i32
    %c0_i32_0 = arith.constant 0 : i32
    %c0_i32_1 = arith.constant 0 : i32
    return %c0_i32, %c0_i32_0 : i32, i32
  }
  func.func @transform_5(%arg0: i32) -> (i32, i32) {
    %c0_i32 = arith.constant 0 : i32
    %c0_i32_0 = arith.constant 0 : i32
    return %arg0, %c0_i32 : i32, i32
  }
  func.func @transform_6(%arg0: i32) -> (i32, i32) {
    %c0_i32 = arith.constant 0 : i32
    %c0_i32_0 = arith.constant 0 : i32
    return %arg0, %c0_i32 : i32, i32
  }
}

</mosaic_0001>

<bundles_post_ra>
// kernel: graph_sage_forward.3
= control target key start
LH: loop header
LB: loop body
LE: loop exit
PB: predicated region body
PF: predicated region fallthrough
CT: control target
= control target key end

     0   :  { %s1042_s12 = smov 0   ;;  %s1044_s13 = smov 0   ;;  %s1222_s0 = inlined_call_operand.vmem [shape: f32[200,200], index: 0, kind: input, shape index: {}]   ;;  %s1223_s1 = inlined_call_operand.vmem [shape: bf16[256,128], index: 1, kind: input, shape index: {}]   ;;  %s1224_s2 = inlined_call_operand.vmem [shape: f32[256,128], index: 2, kind: input, shape index: {}]   ;;  %s1225_s3 = inlined_call_operand.vmem [shape: f32[256,128], index: 3, kind: output, shape index: {}]  }
   0x1   :  { %s1046_s14 = smov 0  }
   0x2 LB: > { %s25_s15 = sadd.s32 1, %s1016_s13  ;;  %p827_p0 = scmp.ge.s32.totalorder %s1020_s14, 1  ;;  %s1020_s14 = sphi %s1046_s14, %s13_s14   ;;  %s1016_s13 = sphi %s1044_s13, %s1229_s13   ;;  %s1012_s12 = sphi %s1042_s12, %s1228_s12  }
   0x3   : > { %p27_p1 = scmp.ge.s32.totalorder %s25_s15, 2  ;;  %p190_p2 = scmp.lt.s32.totalorder %s1020_s14, 3 }
   0x5   : > { %s1231_s15 = smov (%p27_p1, %s25_s15), 0  ;;  %p191_p3 = pnand %p827_p0, %p190_p2 }
   0x6   : > { %v982_v0 = vld [vmem:[%s1223_s1 + $0x40] sm:$0xff] (!%p191_p3)   ;;  %s1063_s18 = sshll.u32 (!%p191_p3), %s1012_s12, 4  ;;  %v984_v2 = vld [vmem:[%s1223_s1 + $0x48] sm:$0xff] (!%p191_p3)   ;;  %v344_v4 = vlaneseq (!%p191_p3)  ;;  %v986_v5 = vld [vmem:[%s1223_s1 + $0x50] sm:$0xff] (!%p191_p3)  }
   0x7   : > { %194 = sbr.rel (%p191_p3) target bundleno = 285 (0x11d), region = 32  ;;  %v983_v1 = vld [vmem:[%s1223_s1] sm:$0xff] (!%p191_p3)   ;;  %878 = vmatprep.subr.bf16.mxu0 (!%p191_p3), %v982_v0  ;;  %942 = vmatprep.subr.bf16.mxu1 (!%p191_p3), %v982_v0  ;;  %p241_p4 = scmp.lt.s32.totalorder (!%p191_p3), %s1063_s18, 24  ;;  %v985_v3 = vld [vmem:[%s1223_s1 + $0x8] sm:$0xff] (!%p191_p3)   ;;  %v987_v6 = vld [vmem:[%s1223_s1 + $0x10] sm:$0xff] (!%p191_p3)  }
   0x8   : > { %879 = vmatpush3.bf16.msra.mxu0 (!%p191_p3), %v983_v1  ;;  %950 = vmatpush3.bf16.msra.mxu1 (!%p191_p3), %v983_v1  ;;  %v345_v7 = vand.u32 (!%p191_p3), 127, %v344_v4  ;;  %v988_v8 = vld [vmem:[%s1223_s1 + $0x58] sm:$0xff] (!%p191_p3)   ;;  %v990_v11 = vld [vmem:[%s1223_s1 + $0x60] sm:$0xff] (!%p191_p3)   ;;  %v992_v13 = vld [vmem:[%s1223_s1 + $0x68] sm:$0xff] (!%p191_p3)   ;;  %p263_p5 = scmp.lt.s32.totalorder (!%p191_p3), %s1063_s18, 31 }
   0x9   : > { %880 = vmatprep.subr.bf16.mxu0 (!%p191_p3), %v984_v2  ;;  %943 = vmatprep.subr.bf16.mxu1 (!%p191_p3), %v984_v2  ;;  %v989_v9 = vld [vmem:[%s1223_s1 + $0x18] sm:$0xff] (!%p191_p3)   ;;  %v991_v12 = vld [vmem:[%s1223_s1 + $0x20] sm:$0xff] (!%p191_p3)   ;;  %v993_v21 = vld [vmem:[%s1223_s1 + $0x28] sm:$0xff] (!%p191_p3)  }
   0xa   : > { %v346_v10 = vadd.s32 (!%p191_p3), 128, %v345_v7  ;;  %v994_v22 = vld [vmem:[%s1223_s1 + $0x70] sm:$0xff] (!%p191_p3)   ;;  %v996_v24 = vld [vmem:[%s1223_s1 + $0x78] sm:$0xff] (!%p191_p3)  }
   0xb   : > { %v995_v23 = vld [vmem:[%s1223_s1 + $0x30] sm:$0xff] (!%p191_p3)   ;;  %v997_v25 = vld [vmem:[%s1223_s1 + $0x38] sm:$0xff] (!%p191_p3)  }
   0xc   : > { %881 = vmatpush3.bf16.msra.mxu0 (!%p191_p3), %v985_v3  ;;  %951 = vmatpush3.bf16.msra.mxu1 (!%p191_p3), %v985_v3  ;;  %vm351_vm0 = vcmp.lt.s32.totalorder (!%p191_p3), %v346_v10, 200 }
   0xd   : > { %882 = vmatprep.subr.bf16.mxu0 (!%p191_p3), %v986_v5  ;;  %944 = vmatprep.subr.bf16.mxu1 (!%p191_p3), %v986_v5  ;;  %vm1106_vm1 = vmpackc.low (!%p191_p3), %vm351_vm0, %vm351_vm0 }
   0xe   : > { %s242_s27 = scalar_select %p241_p4, %s1063_s18, 24 }
   0xf   : > { %s1233_s18 = smov (!%p263_p5, %s1063_s18), 31 }
  0x10   : > { %s877_s5 = sshll.u32 %s242_s27, 4  ;;  %883 = vmatpush3.bf16.msra.mxu0 %v987_v6  ;;  %952 = vmatpush3.bf16.msra.mxu1 %v987_v6  ;;  %s832_s4 = sshll.u32 %s1233_s18, 3 }
  0x11   : > { %884 = vmatprep.subr.bf16.mxu0 %v988_v8  ;;  %945 = vmatprep.subr.bf16.mxu1 %v988_v8  ;;  %s1094_s12 = scalar_lea.vmem %s1222_s0, %s877_s5  ;;  %s1174_s7 = scalar_lea.vmem %s1224_s2, %s832_s4 }
  0x12   : > { %v312_v14 = vld [vmem:[%s1094_s12 + $0x8] sm:$0xff]  ;;  %v314_v15 = vld [vmem:[%s1094_s12 + $0x18] sm:$0xff]  ;;  %v311_v26 = vld [vmem:[%s1094_s12] sm:$0xff]  ;;  %s1183_s9 = scalar_lea.vmem %s1225_s3, %s832_s4 }
  0x13   : > { %v852_v16 = vpack.c.bf16 %v314_v15, %v312_v14  ;;  %v328_v17 = vld [vmem:[%s1094_s12 + $0x88] sm:$0xff]  ;;  %v330_v18 = vld [vmem:[%s1094_s12 + $0x98] sm:$0xff]  ;;  %v313_v27 = vld [vmem:[%s1094_s12 + $0x10] sm:$0xff] }
  0x14   : > { %885 = vmatpush3.bf16.msra.mxu0 %v989_v9  ;;  %953 = vmatpush3.bf16.msra.mxu1 %v989_v9  ;;  %v864_v20 = vpack.c.bf16 %v330_v18, %v328_v17  ;;  %v327_v28 = vld [vmem:[%s1094_s12 + $0x80] sm:$0xff]  ;;  %v329_v29 = vld [vmem:[%s1094_s12 + $0x90] sm:$0xff]  ;;  %v316_v30 = vld [vmem:[%s1094_s12 + $0x28] sm:$0xff]  ;;  %v400_v34 = vpack.c.bf16 %v313_v27, %v311_v26 }
  0x15   : > { %886 = vmatprep.subr.bf16.mxu0 %v990_v11  ;;  %946 = vmatprep.subr.bf16.mxu1 %v990_v11  ;;  %v318_v31 = vld [vmem:[%s1094_s12 + $0x38] sm:$0xff]  ;;  %v332_v32 = vld [vmem:[%s1094_s12 + $0xa8] sm:$0xff]  ;;  %v408_v35 = vpack.c.bf16 %v329_v29, %v327_v28  ;;  %v315_v38 = vld [vmem:[%s1094_s12 + $0x20] sm:$0xff] }
  0x16   : > { %853 = vmatprep.mubr.msk.bf16.mxu0 %vm1106_vm1, %v852_v16  ;;  %865 = vmatprep.mubr.msk.bf16.mxu1 %vm1106_vm1, %v864_v20  ;;  %v334_v33 = vld [vmem:[%s1094_s12 + $0xb8] sm:$0xff]  ;;  %v855_v36 = vpack.c.bf16 %v318_v31, %v316_v30  ;;  %v317_v39 = vld [vmem:[%s1094_s12 + $0x30] sm:$0xff]  ;;  %v331_v40 = vld [vmem:[%s1094_s12 + $0xa0] sm:$0xff] }
  0x17   : > { %v867_v37 = vpack.c.bf16 %v334_v33, %v332_v32  ;;  %v333_v41 = vld [vmem:[%s1094_s12 + $0xb0] sm:$0xff]  ;;  %v320_v42 = vld [vmem:[%s1094_s12 + $0x48] sm:$0xff]  ;;  %v322_v43 = vld [vmem:[%s1094_s12 + $0x58] sm:$0xff]  ;;  %v402_v46 = vpack.c.bf16 %v317_v39, %v315_v38 }
  0x18   : > { %887 = vmatpush3.bf16.msra.mxu0 %v991_v12  ;;  %954 = vmatpush3.bf16.msra.mxu1 %v991_v12  ;;  %v336_v44 = vld [vmem:[%s1094_s12 + $0xc8] sm:$0xff]  ;;  %v338_v45 = vld [vmem:[%s1094_s12 + $0xd8] sm:$0xff]  ;;  %v410_v47 = vpack.c.bf16 %v333_v41, %v331_v40  ;;  %v858_v48 = vpack.c.bf16 %v322_v43, %v320_v42  ;;  %v319_v50 = vld [vmem:[%s1094_s12 + $0x40] sm:$0xff] }
  0x19   : > { %888 = vmatprep.subr.bf16.mxu0 %v992_v13  ;;  %947 = vmatprep.subr.bf16.mxu1 %v992_v13  ;;  %v870_v49 = vpack.c.bf16 %v338_v45, %v336_v44  ;;  %v321_v51 = vld [vmem:[%s1094_s12 + $0x50] sm:$0xff]  ;;  %v335_v52 = vld [vmem:[%s1094_s12 + $0xc0] sm:$0xff]  ;;  %v324_v54 = vld [vmem:[%s1094_s12 + $0x68] sm:$0xff] }
  0x1a   : > { %v337_v53 = vld [vmem:[%s1094_s12 + $0xd0] sm:$0xff]  ;;  %v326_v55 = vld [vmem:[%s1094_s12 + $0x78] sm:$0xff]  ;;  %v340_v56 = vld [vmem:[%s1094_s12 + $0xe8] sm:$0xff]  ;;  %v404_v58 = vpack.c.bf16 %v321_v51, %v319_v50 }
  0x1b   : > { %v342_v57 = vld [vmem:[%s1094_s12 + $0xf8] sm:$0xff]  ;;  %v412_v59 = vpack.c.bf16 %v337_v53, %v335_v52  ;;  %v861_v60 = vpack.c.bf16 %v326_v55, %v324_v54  ;;  %v323_v62 = vld [vmem:[%s1094_s12 + $0x60] sm:$0xff]  ;;  %v325_v63 = vld [vmem:[%s1094_s12 + $0x70] sm:$0xff] }
  0x1c   : > { %889 = vmatpush3.bf16.msra.mxu0 %v993_v21  ;;  %955 = vmatpush3.bf16.msra.mxu1 %v993_v21  ;;  %v873_v61 = vpack.c.bf16 %v342_v57, %v340_v56  ;;  %v339_v0 = vld [vmem:[%s1094_s12 + $0xe0] sm:$0xff]  ;;  %v341_v1 = vld [vmem:[%s1094_s12 + $0xf0] sm:$0xff]  ;;  %v406_v2 = vpack.c.bf16 %v325_v63, %v323_v62  ;;  %v280_v14 = vld [vmem:[%s1174_s7 + $0x8] sm:$0xff] }
  0x1d   : > { %890 = vmatprep.subr.bf16.mxu0 %v994_v22  ;;  %948 = vmatprep.subr.bf16.mxu1 %v994_v22  ;;  %v414_v3 = vpack.c.bf16 %v341_v1, %v339_v0  ;;  %v279_v6 = vld [vmem:[%s1174_s7] sm:$0xff]  ;;  %v288_v16 = vld [vmem:[%s1174_s7 + $0x48] sm:$0xff]  ;;  %v281_v30 = vld [vmem:[%s1174_s7 + $0x10] sm:$0xff] }
  0x1e   : > { %v287_v8 = vld [vmem:[%s1174_s7 + $0x40] sm:$0xff]  ;;  %v289_v32 = vld [vmem:[%s1174_s7 + $0x50] sm:$0xff]  ;;  %v282_v38 = vld [vmem:[%s1174_s7 + $0x18] sm:$0xff] }
  0x1f   : > { %v290_v40 = vld [vmem:[%s1174_s7 + $0x58] sm:$0xff]  ;;  %v283_v54 = vld [vmem:[%s1174_s7 + $0x20] sm:$0xff]  ;;  %v284_v62 = vld [vmem:[%s1174_s7 + $0x28] sm:$0xff] }
  0x20   : > { %891 = vmatpush3.bf16.msra.mxu0 %v995_v23  ;;  %956 = vmatpush3.bf16.msra.mxu1 %v995_v23  ;;  %v291_v56 = vld [vmem:[%s1174_s7 + $0x60] sm:$0xff]  ;;  %v292_v0 = vld [vmem:[%s1174_s7 + $0x68] sm:$0xff] }
  0x21   : > { %892 = vmatprep.subr.bf16.mxu0 %v996_v24  ;;  %949 = vmatprep.subr.bf16.mxu1 %v996_v24 }
  0x24   : > { %893 = vmatpush3.bf16.msra.mxu0 %v997_v25  ;;  %957 = vmatpush3.bf16.msra.mxu1 %v997_v25 }
  0x27   : > { %577 = vmatmul.mubr.bf16.vlgmr.msra.gmra.mrb[0].mxu0 %v400_v34  ;;  %609 = vmatmul.mubr.bf16.vlgmr.msra.gmra.mrb[0].mxu1 %v408_v35 }
  0x28   : > { %856 = vmatprep.mubr.msk.bf16.mxu0 %vm1106_vm1, %v855_v36  ;;  %868 = vmatprep.mubr.msk.bf16.mxu1 %vm1106_vm1, %v867_v37 }
  0x2f   : > { %585 = vmatmul.mubr.bf16.gmra.mrb[4].mxu0 %v402_v46  ;;  %617 = vmatmul.mubr.bf16.gmra.mrb[4].mxu1 %v410_v47 }
  0x30   : > { %859 = vmatprep.mubr.msk.bf16.mxu0 %vm1106_vm1, %v858_v48  ;;  %871 = vmatprep.mubr.msk.bf16.mxu1 %vm1106_vm1, %v870_v49 }
  0x37   : > { %593 = vmatmul.mubr.bf16.gmra.mrb[8].mxu0 %v404_v58  ;;  %625 = vmatmul.mubr.bf16.gmra.mrb[8].mxu1 %v412_v59 }
  0x38   : > { %862 = vmatprep.mubr.msk.bf16.mxu0 %vm1106_vm1, %v861_v60  ;;  %874 = vmatprep.mubr.msk.bf16.mxu1 %vm1106_vm1, %v873_v61 }
  0x3f   : > { %601 = vmatmul.mubr.bf16.gmra.mrb[12].mxu0 %v406_v2  ;;  %633 = vmatmul.mubr.bf16.gmra.mrb[12].mxu1 %v414_v3 }
  0xfa   : > { %v894_v4 = vpop.f32.mrb[0].mxu0  ;;  %v918_v5 = vpop.f32.mrb[0].mxu1 }
  0xfb   : > { %v895_v7 = vpop.f32.mrb[1].mxu0  ;;  %v919_v9 = vpop.f32.mrb[1].mxu1 }
  0xfc   : > { %v896_v10 = vadd.f32 %v895_v7, %v894_v4  ;;  %v920_v11 = vadd.f32 %v919_v9, %v918_v5  ;;  %v897_v12 = vpop.f32.mrb[2].mxu0  ;;  %v921_v13 = vpop.f32.mrb[2].mxu1 }
  0xfd   : > { %v898_v15 = vpop.f32.mrb[3].mxu0  ;;  %v922_v17 = vpop.f32.mrb[3].mxu1 }
  0xfe   : > { %v641_v18 = vadd.f32 %v896_v10, %v279_v6  ;;  %v649_v19 = vadd.f32 %v920_v11, %v287_v8  ;;  %v899_v20 = vadd.f32 %v898_v15, %v897_v12  ;;  %v923_v21 = vadd.f32 %v922_v17, %v921_v13 }
 0x100   : > { %v692_v22 = vmax.f32 %v641_v18, 0.0  ;;  %v700_v23 = vmax.f32 %v649_v19, 0.0  ;;  %v642_v24 = vadd.f32 %v899_v20, %v280_v14  ;;  %v650_v25 = vadd.f32 %v923_v21, %v288_v16  ;;  %v285_v14 = vld [vmem:[%s1174_s7 + $0x30] sm:$0xff] }
 0x101   : > { %v293_v16 = vld [vmem:[%s1174_s7 + $0x70] sm:$0xff] }
 0x102   : > { %708 = vst [vmem:[%s1183_s9] sm:$0xff] %v692_v22  ;;  %716 = vst [vmem:[%s1183_s9 + $0x40] sm:$0xff] %v700_v23  ;;  %v693_v26 = vmax.f32 %v642_v24, 0.0  ;;  %v701_v27 = vmax.f32 %v650_v25, 0.0  ;;  %v900_v28 = vpop.f32.mrb[4].mxu0  ;;  %v924_v29 = vpop.f32.mrb[4].mxu1  ;;  %v286_v22 = vld [vmem:[%s1174_s7 + $0x38] sm:$0xff] }
 0x103   : > { %v901_v31 = vpop.f32.mrb[5].mxu0  ;;  %v925_v33 = vpop.f32.mrb[5].mxu1  ;;  %v294_v24 = vld [vmem:[%s1174_s7 + $0x78] sm:$0xff] }
 0x104   : > { %709 = vst [vmem:[%s1183_s9 + $0x8] sm:$0xff] %v693_v26  ;;  %717 = vst [vmem:[%s1183_s9 + $0x48] sm:$0xff] %v701_v27  ;;  %v902_v34 = vadd.f32 %v901_v31, %v900_v28  ;;  %v926_v35 = vadd.f32 %v925_v33, %v924_v29  ;;  %v903_v36 = vpop.f32.mrb[6].mxu0  ;;  %v927_v37 = vpop.f32.mrb[6].mxu1 }
 0x105   : > { %v904_v39 = vpop.f32.mrb[7].mxu0  ;;  %v928_v41 = vpop.f32.mrb[7].mxu1 }
 0x106   : > { %v643_v42 = vadd.f32 %v902_v34, %v281_v30  ;;  %v651_v43 = vadd.f32 %v926_v35, %v289_v32  ;;  %v905_v44 = vadd.f32 %v904_v39, %v903_v36  ;;  %v929_v45 = vadd.f32 %v928_v41, %v927_v37 }
 0x108   : > { %v694_v46 = vmax.f32 %v643_v42, 0.0  ;;  %v702_v47 = vmax.f32 %v651_v43, 0.0  ;;  %v644_v48 = vadd.f32 %v905_v44, %v282_v38  ;;  %v652_v49 = vadd.f32 %v929_v45, %v290_v40 }
 0x10a   : > { %710 = vst [vmem:[%s1183_s9 + $0x10] sm:$0xff] %v694_v46  ;;  %718 = vst [vmem:[%s1183_s9 + $0x50] sm:$0xff] %v702_v47  ;;  %v695_v50 = vmax.f32 %v644_v48, 0.0  ;;  %v703_v51 = vmax.f32 %v652_v49, 0.0  ;;  %v906_v52 = vpop.f32.mrb[8].mxu0  ;;  %v930_v53 = vpop.f32.mrb[8].mxu1 }
 0x10b   : > { %v907_v55 = vpop.f32.mrb[9].mxu0  ;;  %v931_v57 = vpop.f32.mrb[9].mxu1 }
 0x10c   : > { %711 = vst [vmem:[%s1183_s9 + $0x18] sm:$0xff] %v695_v50  ;;  %719 = vst [vmem:[%s1183_s9 + $0x58] sm:$0xff] %v703_v51  ;;  %v908_v58 = vadd.f32 %v907_v55, %v906_v52  ;;  %v932_v59 = vadd.f32 %v931_v57, %v930_v53  ;;  %v909_v60 = vpop.f32.mrb[10].mxu0  ;;  %v933_v61 = vpop.f32.mrb[10].mxu1 }
 0x10d   : > { %v910_v63 = vpop.f32.mrb[11].mxu0  ;;  %v934_v1 = vpop.f32.mrb[11].mxu1 }
 0x10e   : > { %v645_v2 = vadd.f32 %v908_v58, %v283_v54  ;;  %v653_v3 = vadd.f32 %v932_v59, %v291_v56  ;;  %v911_v4 = vadd.f32 %v910_v63, %v909_v60  ;;  %v935_v5 = vadd.f32 %v934_v1, %v933_v61 }
 0x110   : > { %v696_v6 = vmax.f32 %v645_v2, 0.0  ;;  %v704_v7 = vmax.f32 %v653_v3, 0.0  ;;  %v646_v8 = vadd.f32 %v911_v4, %v284_v62  ;;  %v654_v9 = vadd.f32 %v935_v5, %v292_v0 }
 0x112   : > { %712 = vst [vmem:[%s1183_s9 + $0x20] sm:$0xff] %v696_v6  ;;  %720 = vst [vmem:[%s1183_s9 + $0x60] sm:$0xff] %v704_v7  ;;  %v697_v10 = vmax.f32 %v646_v8, 0.0  ;;  %v705_v11 = vmax.f32 %v654_v9, 0.0  ;;  %v912_v12 = vpop.f32.mrb[12].mxu0  ;;  %v936_v13 = vpop.f32.mrb[12].mxu1 }
 0x113   : > { %v913_v15 = vpop.f32.mrb[13].mxu0  ;;  %v937_v17 = vpop.f32.mrb[13].mxu1 }
 0x114   : > { %713 = vst [vmem:[%s1183_s9 + $0x28] sm:$0xff] %v697_v10  ;;  %721 = vst [vmem:[%s1183_s9 + $0x68] sm:$0xff] %v705_v11  ;;  %v914_v18 = vadd.f32 %v913_v15, %v912_v12  ;;  %v938_v19 = vadd.f32 %v937_v17, %v936_v13  ;;  %v915_v20 = vpop.f32.mrb[14].mxu0  ;;  %v939_v21 = vpop.f32.mrb[14].mxu1 }
 0x115   : > { %v916_v23 = vpop.f32.mrb[15].mxu0  ;;  %v940_v25 = vpop.f32.mrb[15].mxu1 }
 0x116   : > { %v647_v26 = vadd.f32 %v914_v18, %v285_v14  ;;  %v655_v27 = vadd.f32 %v938_v19, %v293_v16  ;;  %v917_v28 = vadd.f32 %v916_v23, %v915_v20  ;;  %v941_v29 = vadd.f32 %v940_v25, %v939_v21 }
 0x118   : > { %v698_v30 = vmax.f32 %v647_v26, 0.0  ;;  %v706_v31 = vmax.f32 %v655_v27, 0.0  ;;  %v648_v32 = vadd.f32 %v917_v28, %v286_v22  ;;  %v656_v33 = vadd.f32 %v941_v29, %v294_v24 }
 0x11a   : > { %714 = vst [vmem:[%s1183_s9 + $0x30] sm:$0xff] %v698_v30  ;;  %722 = vst [vmem:[%s1183_s9 + $0x70] sm:$0xff] %v706_v31  ;;  %v699_v34 = vmax.f32 %v648_v32, 0.0  ;;  %v707_v35 = vmax.f32 %v656_v33, 0.0 }
 0x11c   : > { %715 = vst [vmem:[%s1183_s9 + $0x38] sm:$0xff] %v699_v34  ;;  %723 = vst [vmem:[%s1183_s9 + $0x78] sm:$0xff] %v707_v35 }
 0x11d PF: > { %s13_s14 = sadd.s32 1, %s1020_s14   ;;  %s1228_s12 = smov %s1016_s13 }
 0x11e   : > { %p10_p6 = scmp.ge.s32.totalorder %s13_s14, 4   ;;  %s1229_s13 = smov %s1231_s15 }
 0x120   :  { %12 = sbr.rel (!%p10_p6) target bundleno = 2 (0x2), region = 76 }

// kernel: graph_sage_forward.2
= control target key start
LH: loop header
LB: loop body
LE: loop exit
PB: predicated region body
PF: predicated region fallthrough
CT: control target
= control target key end

     0   :  { %vm63_vm0 = vcmask 130048   ;;  %s2570_s1 = inlined_call_operand.vmem [shape: f32[16,128], index: 1, kind: input, shape index: {}]   ;;  %s2571_s0 = inlined_call_operand.vmem [shape: f32[256,16], index: 0, kind: input, shape index: {}]   ;;  %s2572_s3 = inlined_call_operand.vmem [shape: f32[128,128], index: 3, kind: input, shape index: {}]   ;;  %s2573_s4 = inlined_call_operand.vmem [shape: f32[16,128], index: 4, kind: input, shape index: {}]   ;;  %s2574_s2 = inlined_call_operand.vmem [shape: f32[1,128], index: 2, kind: input, shape index: {}]   ;;  %s2575_s6 = inlined_call_operand.vmem [shape: f32[256,128], index: 6, kind: output, shape index: {1}]   ;;  %s2576_s5 = inlined_call_operand.vmem [shape: bf16[256,128], index: 5, kind: output, shape index: {0}]  }
   0x1   :  { %v54_v0 = vld [vmem:[%s2570_s1] sm:$0xff]  ;;  %v55_v1 = vld [vmem:[%s2570_s1 + $0x8] sm:$0xff]  ;;  %v2027_v5 = vld [vmem:[%s2571_s0 + $0x10] sm:$0xff] }
   0x2   :  { %v2015_v2 = vld [vmem:[%s2571_s0] sm:$0xff]  ;;  %v1801_v3 = vpack.c.bf16 %v55_v1, %v54_v0  ;;  %v2022_v4 = vld [vmem:[%s2571_s0 + $0x8] sm:$0xff]  ;;  %v2042_v8 = vld [vmem:[%s2571_s0 + $0x90] sm:$0xff] }
   0x3   :  { %1621 = vmatprep.mubr.msk.f32.mxu0 %vm63_vm0, %v2015_v2  ;;  %v2032_v6 = vld [vmem:[%s2571_s0 + $0x80] sm:$0xff]  ;;  %v2037_v7 = vld [vmem:[%s2571_s0 + $0x88] sm:$0xff]  ;;  %v2053_v9 = vld [vmem:[%s2571_s0 + $0x18] sm:$0xff] }
   0x4   :  { %1802 = vmatprep.subr.bf16.mxu0 %v1801_v3  ;;  %1841 = vmatprep.subr.bf16.mxu1 %v1801_v3  ;;  %v2060_v10 = vld [vmem:[%s2571_s0 + $0x20] sm:$0xff]  ;;  %v2067_v11 = vld [vmem:[%s2571_s0 + $0x98] sm:$0xff]  ;;  %v578_v14 = vld [vmem:[%s2572_s3 + $0x8] sm:$0xff] }
   0x5   :  { %1804 = vmatpush3.bf16.msra.mxu0 %v1801_v3  ;;  %1842 = vmatpush3.bf16.msra.mxu1 %v1801_v3  ;;  %v2072_v12 = vld [vmem:[%s2571_s0 + $0xa0] sm:$0xff]  ;;  %v2087_v15 = vld [vmem:[%s2571_s0 + $0x28] sm:$0xff]  ;;  %v2094_v17 = vld [vmem:[%s2571_s0 + $0x30] sm:$0xff] }
   0x6   :  { %1645 = vmatprep.mubr.msk.f32.mxu1 %vm63_vm0, %v2032_v6  ;;  %v577_v13 = vld [vmem:[%s2572_s3] sm:$0xff]  ;;  %v2101_v18 = vld [vmem:[%s2571_s0 + $0xa8] sm:$0xff]  ;;  %v2106_v19 = vld [vmem:[%s2571_s0 + $0xb0] sm:$0xff] }
   0x7   :  { %v1805_v16 = vpack.c.bf16 %v578_v14, %v577_v13  ;;  %v2115_v20 = vld [vmem:[%s2571_s0 + $0x38] sm:$0xff]  ;;  %v2122_v21 = vld [vmem:[%s2571_s0 + $0x40] sm:$0xff]  ;;  %v2143_v24 = vld [vmem:[%s2571_s0 + $0x48] sm:$0xff] }
   0x8   :  { %1622 = vmatmul.mubr.msk.f32.vlgmr.msra.gmra.mrb[0].mxu0 %vm63_vm0, %v2022_v4  ;;  %1646 = vmatmul.mubr.msk.f32.vlgmr.msra.gmra.mrb[0].mxu1 %vm63_vm0, %v2037_v7  ;;  %v2129_v22 = vld [vmem:[%s2571_s0 + $0xb8] sm:$0xff]  ;;  %v2134_v23 = vld [vmem:[%s2571_s0 + $0xc0] sm:$0xff]  ;;  %v2150_v25 = vld [vmem:[%s2571_s0 + $0x50] sm:$0xff] }
   0x9   :  { %1624 = vmatprep.mubr.msk.f32.mxu0 %vm63_vm0, %v2027_v5  ;;  %1648 = vmatprep.mubr.msk.f32.mxu1 %vm63_vm0, %v2042_v8  ;;  %v2157_v26 = vld [vmem:[%s2571_s0 + $0xc8] sm:$0xff]  ;;  %v2162_v27 = vld [vmem:[%s2571_s0 + $0xd0] sm:$0xff]  ;;  %v2171_v28 = vld [vmem:[%s2571_s0 + $0x58] sm:$0xff] }
   0xa   :  { %1806 = vmatprep.subr.bf16.mxu1 %v1805_v16  ;;  %v2178_v29 = vld [vmem:[%s2571_s0 + $0x60] sm:$0xff]  ;;  %v2185_v30 = vld [vmem:[%s2571_s0 + $0xd8] sm:$0xff]  ;;  %v2199_v32 = vld [vmem:[%s2571_s0 + $0x68] sm:$0xff] }
   0xb   :  { %1808 = vmatpush3.bf16.msra.mxu1 %v1805_v16  ;;  %v2190_v31 = vld [vmem:[%s2571_s0 + $0xe0] sm:$0xff]  ;;  %v2206_v33 = vld [vmem:[%s2571_s0 + $0x70] sm:$0xff]  ;;  %v2213_v34 = vld [vmem:[%s2571_s0 + $0xe8] sm:$0xff] }
   0xc   :  { %1625 = vmatmul.mubr.msk.f32.gmra.mrb[2].mxu0 %vm63_vm0, %v2053_v9  ;;  %1649 = vmatmul.mubr.msk.f32.gmra.mrb[2].mxu1 %vm63_vm0, %v2067_v11  ;;  %v2218_v35 = vld [vmem:[%s2571_s0 + $0xf0] sm:$0xff]  ;;  %v37_v36 = vld [vmem:[%s2571_s0 + $0x78] sm:$0xff]  ;;  %v581_v41 = vld [vmem:[%s2572_s3 + $0x20] sm:$0xff] }
   0xd   :  { %1627 = vmatprep.mubr.msk.f32.mxu0 %vm63_vm0, %v2060_v10  ;;  %1651 = vmatprep.mubr.msk.f32.mxu1 %vm63_vm0, %v2072_v12  ;;  %v2234_v37 = vld [vmem:[%s2571_s0 + $0xf8] sm:$0xff]  ;;  %v579_v38 = vld [vmem:[%s2572_s3 + $0x10] sm:$0xff]  ;;  %v582_v42 = vld [vmem:[%s2572_s3 + $0x28] sm:$0xff] }
   0xe   :  { %v580_v39 = vld [vmem:[%s2572_s3 + $0x18] sm:$0xff]  ;;  %v1813_v43 = vpack.c.bf16 %v582_v42, %v581_v41  ;;  %v583_v44 = vld [vmem:[%s2572_s3 + $0x30] sm:$0xff]  ;;  %v585_v47 = vld [vmem:[%s2572_s3 + $0x40] sm:$0xff] }
   0xf   :  { %v1809_v40 = vpack.c.bf16 %v580_v39, %v579_v38  ;;  %v584_v45 = vld [vmem:[%s2572_s3 + $0x38] sm:$0xff]  ;;  %v586_v48 = vld [vmem:[%s2572_s3 + $0x48] sm:$0xff]  ;;  %v587_v50 = vld [vmem:[%s2572_s3 + $0x50] sm:$0xff] }
  0x10   :  { %1628 = vmatmul.mubr.msk.f32.gmra.mrb[4].mxu0 %vm63_vm0, %v2087_v15  ;;  %1652 = vmatmul.mubr.msk.f32.gmra.mrb[4].mxu1 %vm63_vm0, %v2101_v18  ;;  %v1817_v46 = vpack.c.bf16 %v584_v45, %v583_v44  ;;  %v1821_v49 = vpack.c.bf16 %v586_v48, %v585_v47  ;;  %v588_v51 = vld [vmem:[%s2572_s3 + $0x58] sm:$0xff]  ;;  %v978_v52 = vld [vmem:[%s2573_s4] sm:$0xff]  ;;  %v979_v53 = vld [vmem:[%s2573_s4 + $0x8] sm:$0xff] }
  0x11   :  { %1630 = vmatprep.mubr.msk.f32.mxu0 %vm63_vm0, %v2094_v17  ;;  %1654 = vmatprep.mubr.msk.f32.mxu1 %vm63_vm0, %v2106_v19  ;;  %v1825_v54 = vpack.c.bf16 %v588_v51, %v587_v50  ;;  %v1837_v55 = vpack.c.bf16 %v979_v53, %v978_v52  ;;  %v589_v56 = vld [vmem:[%s2572_s3 + $0x60] sm:$0xff]  ;;  %v590_v57 = vld [vmem:[%s2572_s3 + $0x68] sm:$0xff]  ;;  %v591_v59 = vld [vmem:[%s2572_s3 + $0x70] sm:$0xff] }
  0x12   :  { %1810 = vmatprep.subr.bf16.mxu1 %v1809_v40  ;;  %v1829_v58 = vpack.c.bf16 %v590_v57, %v589_v56  ;;  %v592_v60 = vld [vmem:[%s2572_s3 + $0x78] sm:$0xff]  ;;  %v2353_v62 = vld [vmem:[%s2574_s2] ss:$0 sm:$0xff] }
  0x13   :  { %1812 = vmatpush3.bf16.msra.mxu1 %v1809_v40  ;;  %1838 = vmatprep.subr.bf16.mxu0 %v1837_v55  ;;  %v1833_v61 = vpack.c.bf16 %v592_v60, %v591_v59 }
  0x14   :  { %1631 = vmatmul.mubr.msk.f32.gmra.mrb[6].mxu0 %vm63_vm0, %v2115_v20  ;;  %1655 = vmatmul.mubr.msk.f32.gmra.mrb[6].mxu1 %vm63_vm0, %v2129_v22 }
  0x15   :  { %1633 = vmatprep.mubr.msk.f32.mxu0 %vm63_vm0, %v2122_v21  ;;  %1657 = vmatprep.mubr.msk.f32.mxu1 %vm63_vm0, %v2134_v23 }
  0x16   :  { %1814 = vmatprep.subr.bf16.mxu1 %v1813_v43  ;;  %1840 = vmatpush3.bf16.msra.mxu0 %v1837_v55 }
  0x17   :  { %1816 = vmatpush3.bf16.msra.mxu1 %v1813_v43 }
  0x18   :  { %1634 = vmatmul.mubr.msk.f32.gmra.mrb[8].mxu0 %vm63_vm0, %v2143_v24  ;;  %1658 = vmatmul.mubr.msk.f32.gmra.mrb[8].mxu1 %vm63_vm0, %v2157_v26 }
  0x19   :  { %1636 = vmatprep.mubr.msk.f32.mxu0 %vm63_vm0, %v2150_v25  ;;  %1660 = vmatprep.mubr.msk.f32.mxu1 %vm63_vm0, %v2162_v27 }
  0x1a   :  { %1818 = vmatprep.subr.bf16.mxu1 %v1817_v46 }
  0x1b   :  { %1820 = vmatpush3.bf16.msra.mxu1 %v1817_v46 }
  0x1c   :  { %1637 = vmatmul.mubr.msk.f32.gmra.mrb[10].mxu0 %vm63_vm0, %v2171_v28  ;;  %1661 = vmatmul.mubr.msk.f32.gmra.mrb[10].mxu1 %vm63_vm0, %v2185_v30 }
  0x1d   :  { %1639 = vmatprep.mubr.msk.f32.mxu0 %vm63_vm0, %v2178_v29  ;;  %1663 = vmatprep.mubr.msk.f32.mxu1 %vm63_vm0, %v2190_v31 }
  0x1e   :  { %1822 = vmatprep.subr.bf16.mxu1 %v1821_v49 }
  0x1f   :  { %1824 = vmatpush3.bf16.msra.mxu1 %v1821_v49 }
  0x20   :  { %1640 = vmatmul.mubr.msk.f32.gmra.mrb[12].mxu0 %vm63_vm0, %v2199_v32  ;;  %1664 = vmatmul.mubr.msk.f32.gmra.mrb[12].mxu1 %vm63_vm0, %v2213_v34 }
  0x21   :  { %1642 = vmatprep.mubr.msk.f32.mxu0 %vm63_vm0, %v2206_v33  ;;  %1666 = vmatprep.mubr.msk.f32.mxu1 %vm63_vm0, %v2218_v35 }
  0x22   :  { %1826 = vmatprep.subr.bf16.mxu1 %v1825_v54 }
  0x23   :  { %1828 = vmatpush3.bf16.msra.mxu1 %v1825_v54 }
  0x24   :  { %1643 = vmatmul.mubr.msk.f32.gmra.mrb[14].mxu0 %vm63_vm0, %v37_v36  ;;  %1667 = vmatmul.mubr.msk.f32.gmra.mrb[14].mxu1 %vm63_vm0, %v2234_v37 }
  0x25   :  { %1753 = vmatprep.mubr.msk.f32.mxu0 %vm63_vm0, %v2015_v2  ;;  %1830 = vmatprep.subr.bf16.mxu1 %v1829_v58 }
  0x27   :  { %1832 = vmatpush3.bf16.msra.mxu1 %v1829_v58 }
  0x28   :  { %1754 = vmatmul.mubr.msk.f32.vlgmr.msra.gmra.mrb[16].mxu0 %vm63_vm0, %v2022_v4  ;;  %1834 = vmatprep.subr.bf16.mxu1 %v1833_v61 }
  0x29   :  { %1756 = vmatprep.mubr.msk.f32.mxu0 %vm63_vm0, %v2027_v5 }
  0x2b   :  { %1836 = vmatpush3.bf16.msra.mxu1 %v1833_v61 }
  0x2c   :  { %1757 = vmatmul.mubr.msk.f32.gmra.mrb[18].mxu0 %vm63_vm0, %v2053_v9 }
  0x2d   :  { %1759 = vmatprep.mubr.msk.f32.mxu0 %vm63_vm0, %v2060_v10 }
  0x30   :  { %1760 = vmatmul.mubr.msk.f32.gmra.mrb[20].mxu0 %vm63_vm0, %v2087_v15 }
  0x31   :  { %1762 = vmatprep.mubr.msk.f32.mxu0 %vm63_vm0, %v2094_v17 }
  0x34   :  { %1763 = vmatmul.mubr.msk.f32.gmra.mrb[22].mxu0 %vm63_vm0, %v2115_v20 }
  0x35   :  { %1765 = vmatprep.mubr.msk.f32.mxu0 %vm63_vm0, %v2122_v21 }
  0x38   :  { %1766 = vmatmul.mubr.msk.f32.gmra.mrb[24].mxu0 %vm63_vm0, %v2143_v24 }
  0x39   :  { %1768 = vmatprep.mubr.msk.f32.mxu0 %vm63_vm0, %v2150_v25 }
  0x3c   :  { %1769 = vmatmul.mubr.msk.f32.gmra.mrb[26].mxu0 %vm63_vm0, %v2171_v28 }
  0x3d   :  { %1771 = vmatprep.mubr.msk.f32.mxu0 %vm63_vm0, %v2178_v29 }
  0x40   :  { %1772 = vmatmul.mubr.msk.f32.gmra.mrb[28].mxu0 %vm63_vm0, %v2199_v32 }
  0x41   :  { %1774 = vmatprep.mubr.msk.f32.mxu0 %vm63_vm0, %v2206_v33 }
  0x44   :  { %1775 = vmatmul.mubr.msk.f32.gmra.mrb[30].mxu0 %vm63_vm0, %v37_v36 }
  0x45   :  { %1777 = vmatprep.mubr.msk.f32.mxu0 %vm63_vm0, %v2032_v6 }
  0x48   :  { %1778 = vmatmul.mubr.msk.f32.gmra.mrb[32].mxu0 %vm63_vm0, %v2037_v7 }
  0x49   :  { %1780 = vmatprep.mubr.msk.f32.mxu0 %vm63_vm0, %v2042_v8 }
  0x4c   :  { %1781 = vmatmul.mubr.msk.f32.gmra.mrb[34].mxu0 %vm63_vm0, %v2067_v11 }
  0x4d   :  { %1783 = vmatprep.mubr.msk.f32.mxu0 %vm63_vm0, %v2072_v12 }
  0x50   :  { %1784 = vmatmul.mubr.msk.f32.gmra.mrb[36].mxu0 %vm63_vm0, %v2101_v18 }
  0x51   :  { %1786 = vmatprep.mubr.msk.f32.mxu0 %vm63_vm0, %v2106_v19 }
  0x54   :  { %1787 = vmatmul.mubr.msk.f32.gmra.mrb[38].mxu0 %vm63_vm0, %v2129_v22 }
  0x55   :  { %1789 = vmatprep.mubr.msk.f32.mxu0 %vm63_vm0, %v2134_v23 }
  0x58   :  { %1790 = vmatmul.mubr.msk.f32.gmra.mrb[40].mxu0 %vm63_vm0, %v2157_v26 }
  0x59   :  { %1792 = vmatprep.mubr.msk.f32.mxu0 %vm63_vm0, %v2162_v27 }
  0x5c   :  { %1793 = vmatmul.mubr.msk.f32.gmra.mrb[42].mxu0 %vm63_vm0, %v2185_v30 }
  0x5d   :  { %1795 = vmatprep.mubr.msk.f32.mxu0 %vm63_vm0, %v2190_v31 }
  0x60   :  { %1796 = vmatmul.mubr.msk.f32.gmra.mrb[44].mxu0 %vm63_vm0, %v2213_v34 }
  0x61   :  { %1798 = vmatprep.mubr.msk.f32.mxu0 %vm63_vm0, %v2218_v35 }
  0x64   :  { %1799 = vmatmul.mubr.msk.f32.gmra.mrb[46].mxu0 %vm63_vm0, %v2234_v37 }
  0xdb   :  { %v1623_v63 = vpop.f32.mrb[0].mxu0  ;;  %v1647_v2 = vpop.f32.mrb[0].mxu1 }
  0xdc   :  { %v232_v0 = vadd.f32 %v1623_v63, %v2353_v62  ;;  %v226_v1 = vpop.f32.mrb[1].mxu0  ;;  %v306_v4 = vpop.f32.mrb[1].mxu1  ;;  %v312_v14 = vadd.f32 %v1647_v2, %v2353_v62 }
  0xdd   :  { %v227_v3 = vadd.f32 %v2353_v62, %v226_v1  ;;  %v307_v17 = vadd.f32 %v2353_v62, %v306_v4 }
  0xde   :  { %v1279_v5 = vmul.f32 -1.442695, %v232_v0  ;;  %v1295_v24 = vmul.f32 -1.442695, %v312_v14 }
  0xdf   :  { %v1278_v6 = vmul.f32 -1.442695, %v227_v3  ;;  %v1626_v7 = vpop.f32.mrb[2].mxu0  ;;  %v2358_v10 = vpop.f32.mrb[2].mxu1  ;;  %v1294_v27 = vmul.f32 -1.442695, %v307_v17 }
  0xe0   :  { %1843 = vpow2.f32 %v1279_v5  ;;  %v242_v8 = vadd.f32 %v1626_v7, %v2353_v62  ;;  %v236_v9 = vpop.f32.mrb[3].mxu0  ;;  %v316_v12 = vpop.f32.mrb[3].mxu1 }
  0xe1   :  { %1845 = vpow2.f32 %v1278_v6  ;;  %v237_v11 = vadd.f32 %v2353_v62, %v236_v9  ;;  %v317_v56 = vadd.f32 %v2353_v62, %v316_v12 }
  0xe2   :  { %v1281_v13 = vmul.f32 -1.442695, %v242_v8 }
  0xe3   :  { %v1280_v15 = vmul.f32 -1.442695, %v237_v11  ;;  %v1629_v16 = vpop.f32.mrb[4].mxu0  ;;  %v2364_v20 = vpop.f32.mrb[4].mxu1  ;;  %v1296_v9 = vmul.f32 -1.442695, %v317_v56 }
  0xe4   :  { %1847 = vpow2.f32 %v1281_v13  ;;  %v252_v18 = vadd.f32 %v1629_v16, %v2353_v62  ;;  %v246_v19 = vpop.f32.mrb[5].mxu0  ;;  %v326_v22 = vpop.f32.mrb[5].mxu1 }
  0xe5   :  { %1849 = vpow2.f32 %v1280_v15  ;;  %v247_v21 = vadd.f32 %v2353_v62, %v246_v19  ;;  %v327_v1 = vadd.f32 %v2353_v62, %v326_v22 }
  0xe6   :  { %v1283_v23 = vmul.f32 -1.442695, %v252_v18 }
  0xe7   :  { %v1282_v25 = vmul.f32 -1.442695, %v247_v21  ;;  %v1632_v26 = vpop.f32.mrb[6].mxu0  ;;  %v2368_v30 = vpop.f32.mrb[6].mxu1  ;;  %v1298_v17 = vmul.f32 -1.442695, %v327_v1 }
  0xe8   :  { %1851 = vpow2.f32 %v1283_v23  ;;  %v262_v28 = vadd.f32 %v1632_v26, %v2353_v62  ;;  %v256_v29 = vpop.f32.mrb[7].mxu0  ;;  %v2371_v32 = vpop.f32.mrb[7].mxu1 }
  0xe9   :  { %1853 = vpow2.f32 %v1282_v25  ;;  %v257_v31 = vadd.f32 %v2353_v62, %v256_v29 }
  0xea   :  { %v1844_v33 = vpop.eup %1843  ;;  %v1285_v34 = vmul.f32 -1.442695, %v262_v28  ;;  %1855 = vpow2.f32 %v1295_v24 }
  0xeb   :  { %v1846_v35 = vpop.eup %1845  ;;  %v482_v36 = vadd.f32 1.0, %v1844_v33  ;;  %v1284_v37 = vmul.f32 -1.442695, %v257_v31  ;;  %v1635_v38 = vpop.f32.mrb[8].mxu0  ;;  %1857 = vpow2.f32 %v1294_v27  ;;  %v322_v31 = vadd.f32 %v2358_v10, %v2353_v62 }
  0xec   :  { %v481_v39 = vadd.f32 1.0, %v1846_v35  ;;  %1859 = vpow2.f32 %v1285_v34  ;;  %v272_v40 = vadd.f32 %v1635_v38, %v2353_v62  ;;  %v266_v41 = vpop.f32.mrb[9].mxu0  ;;  %v2374_v42 = vpop.f32.mrb[8].mxu1  ;;  %v332_v35 = vadd.f32 %v2364_v20, %v2353_v62 }
  0xed   :  { %1861 = vrcp.f32 %v482_v36  ;;  %v267_v43 = vadd.f32 %v2353_v62, %v266_v41  ;;  %v2377_v44 = vpop.f32.mrb[9].mxu1  ;;  %v1297_v41 = vmul.f32 -1.442695, %v322_v31  ;;  %v352_v1 = vadd.f32 %v2374_v42, %v2353_v62 }
  0xee   :  { %v1848_v45 = vpop.eup %1847  ;;  %1863 = vrcp.f32 %v481_v39  ;;  %v1287_v46 = vmul.f32 -1.442695, %v272_v40  ;;  %v1299_v10 = vmul.f32 -1.442695, %v332_v35 }
  0xef   :  { %v1850_v47 = vpop.eup %1849  ;;  %v484_v48 = vadd.f32 1.0, %v1848_v45  ;;  %1865 = vpow2.f32 %v1284_v37  ;;  %v1286_v49 = vmul.f32 -1.442695, %v267_v43  ;;  %v1638_v50 = vpop.f32.mrb[10].mxu0  ;;  %v1303_v42 = vmul.f32 -1.442695, %v352_v1 }
  0xf0   :  { %v483_v51 = vadd.f32 1.0, %v1850_v47  ;;  %1867 = vpow2.f32 %v1287_v46  ;;  %v282_v52 = vadd.f32 %v1638_v50, %v2353_v62  ;;  %v276_v53 = vpop.f32.mrb[11].mxu0  ;;  %v2380_v54 = vpop.f32.mrb[10].mxu1  ;;  %v342_v50 = vadd.f32 %v2368_v30, %v2353_v62 }
  0xf1   :  { %1869 = vrcp.f32 %v484_v48  ;;  %v277_v55 = vadd.f32 %v2353_v62, %v276_v53  ;;  %v2384_v57 = vpop.f32.mrb[11].mxu1  ;;  %v347_v30 = vadd.f32 %v2353_v62, %v2377_v44 }
  0xf2   :  { %v1852_v58 = vpop.eup %1851  ;;  %1871 = vrcp.f32 %v483_v51  ;;  %v1289_v59 = vmul.f32 -1.442695, %v282_v52 }
  0xf3   :  { %v1854_v60 = vpop.eup %1853  ;;  %v486_v61 = vadd.f32 1.0, %v1852_v58  ;;  %1873 = vpow2.f32 %v1286_v49  ;;  %v1288_v63 = vmul.f32 -1.442695, %v277_v55  ;;  %v1641_v0 = vpop.f32.mrb[12].mxu0  ;;  %v1302_v44 = vmul.f32 -1.442695, %v347_v30 }
  0xf4   :  { %v1856_v2 = vpop.eup %1855  ;;  %v485_v3 = vadd.f32 1.0, %v1854_v60  ;;  %1875 = vpow2.f32 %v1289_v59  ;;  %v292_v4 = vadd.f32 %v1641_v0, %v2353_v62  ;;  %v286_v5 = vpop.f32.mrb[13].mxu0  ;;  %v337_v59 = vadd.f32 %v2353_v62, %v2371_v32 }
  0xf5   :  { %v2388_v6 = vpop.f32.mrb[12].mxu1  ;;  %v2390_v7 = vpop.eup %1857  ;;  %1877 = vrcp.f32 %v486_v61  ;;  %v287_v8 = vadd.f32 %v2353_v62, %v286_v5  ;;  %v498_v49 = vadd.f32 1.0, %v1856_v2  ;;  %v1301_v61 = vmul.f32 -1.442695, %v342_v50 }
  0xf6   :  { %v2393_v11 = vpop.f32.mrb[13].mxu1  ;;  %v1860_v12 = vpop.eup %1859  ;;  %1879 = vrcp.f32 %v485_v3  ;;  %v1291_v13 = vmul.f32 -1.442695, %v292_v4  ;;  %v497_v53 = vadd.f32 1.0, %v2390_v7  ;;  %v1300_v4 = vmul.f32 -1.442695, %v337_v59 }
  0xf7   :  { %v1862_v14 = vpop.eup %1861  ;;  %1881 = vpow2.f32 %v1288_v63  ;;  %v1290_v15 = vmul.f32 -1.442695, %v287_v8  ;;  %v1644_v16 = vpop.f32.mrb[14].mxu0  ;;  %v488_v24 = vadd.f32 1.0, %v1860_v12  ;;  %v357_v32 = vadd.f32 %v2353_v62, %v2384_v57 }
  0xf8   :  { %v1864_v18 = vpop.eup %1863  ;;  %1883 = vpow2.f32 %v1291_v13  ;;  %v302_v19 = vadd.f32 %v1644_v16, %v2353_v62  ;;  %v296_v21 = vpop.f32.mrb[15].mxu0  ;;  %v367_v12 = vadd.f32 %v2353_v62, %v2393_v11 }
  0xf9   :  { %v2396_v22 = vpop.f32.mrb[14].mxu1  ;;  %v1866_v23 = vpop.eup %1865  ;;  %v297_v25 = vadd.f32 %v2353_v62, %v296_v21  ;;  %1701 = vmatprep.mubr.f32.mxu1 %v1864_v18  ;;  %1885 = vpow2.f32 %v1296_v9  ;;  %v1304_v57 = vmul.f32 -1.442695, %v357_v32 }
  0xfa   :  { %v2399_v26 = vpop.f32.mrb[15].mxu1  ;;  %v1868_v27 = vpop.eup %1867  ;;  %v487_v28 = vadd.f32 1.0, %v1866_v23  ;;  %1887 = vpow2.f32 %v1290_v15  ;;  %v1293_v29 = vmul.f32 -1.442695, %v302_v19  ;;  %1702 = vmatmul.mubr.f32.vlgmr.msra.gmra.mrb[16].mxu1 %v1862_v14  ;;  %v362_v14 = vadd.f32 %v2380_v54, %v2353_v62 }
  0xfb   :  { %v1870_v33 = vpop.eup %1869  ;;  %v1292_v34 = vmul.f32 -1.442695, %v297_v25  ;;  %1889 = vpow2.f32 %v1298_v17  ;;  %v490_v38 = vadd.f32 1.0, %v1868_v27  ;;  %v1306_v19 = vmul.f32 -1.442695, %v367_v12 }
  0xfc   :  { %v1872_v36 = vpop.eup %1871  ;;  %1891 = vrcp.f32 %v487_v28  ;;  %v377_v11 = vadd.f32 %v2353_v62, %v2399_v26  ;;  %v1305_v23 = vmul.f32 -1.442695, %v362_v14  ;;  %v372_v54 = vadd.f32 %v2388_v6, %v2353_v62 }
  0xfd   :  { %v1874_v37 = vpop.eup %1873  ;;  %1893 = vrcp.f32 %v488_v24  ;;  %1704 = vmatprep.mubr.f32.mxu1 %v1872_v36 }
  0xfe   :  { %v1876_v39 = vpop.eup %1875  ;;  %v489_v40 = vadd.f32 1.0, %v1874_v37  ;;  %1895 = vpow2.f32 %v1293_v29  ;;  %1705 = vmatmul.mubr.f32.gmra.mrb[18].mxu1 %v1870_v33  ;;  %v382_v29 = vadd.f32 %v2396_v22, %v2353_v62  ;;  %v1308_v31 = vmul.f32 -1.442695, %v377_v11 }
  0xff   :  { %v1878_v43 = vpop.eup %1877  ;;  %1897 = vpow2.f32 %v1292_v34  ;;  %v492_v20 = vadd.f32 1.0, %v1876_v39  ;;  %v1307_v33 = vmul.f32 -1.442695, %v372_v54 }
 0x100   :  { %v1880_v45 = vpop.eup %1879  ;;  %1899 = vrcp.f32 %v489_v40  ;;  %v1309_v37 = vmul.f32 -1.442695, %v382_v29 }
 0x101   :  { %v1882_v46 = vpop.eup %1881  ;;  %1901 = vrcp.f32 %v490_v38  ;;  %1707 = vmatprep.mubr.f32.mxu1 %v1880_v45 }
 0x102   :  { %v1884_v47 = vpop.eup %1883  ;;  %v491_v48 = vadd.f32 1.0, %v1882_v46  ;;  %1903 = vpow2.f32 %v1297_v41  ;;  %1708 = vmatmul.mubr.f32.gmra.mrb[20].mxu1 %v1878_v43 }
 0x103   :  { %v1886_v51 = vpop.eup %1885  ;;  %1905 = vpow2.f32 %v1299_v10  ;;  %v494_v56 = vadd.f32 1.0, %v1884_v47 }
 0x104   :  { %v1888_v52 = vpop.eup %1887  ;;  %1907 = vrcp.f32 %v491_v48  ;;  %v499_v8 = vadd.f32 1.0, %v1886_v51 }
 0x105   :  { %v1890_v55 = vpop.eup %1889  ;;  %1909 = vrcp.f32 %v492_v20  ;;  %v493_v58 = vadd.f32 1.0, %v1888_v52 }
 0x106   :  { %v1892_v60 = vpop.eup %1891  ;;  %1911 = vrcp.f32 %v498_v49  ;;  %v501_v17 = vadd.f32 1.0, %v1890_v55 }
 0x107   :  { %v1894_v63 = vpop.eup %1893  ;;  %1913 = vrcp.f32 %v493_v58  ;;  %1710 = vmatprep.mubr.f32.mxu1 %v1892_v60 }
 0x108   :  { %v1896_v0 = vpop.eup %1895  ;;  %1915 = vrcp.f32 %v497_v53  ;;  %1711 = vmatmul.mubr.f32.gmra.mrb[22].mxu1 %v1894_v63 }
 0x109   :  { %v1898_v2 = vpop.eup %1897  ;;  %1917 = vrcp.f32 %v494_v56  ;;  %v496_v3 = vadd.f32 1.0, %v1896_v0 }
 0x10a   :  { %v1900_v5 = vpop.eup %1899  ;;  %v495_v7 = vadd.f32 1.0, %v1898_v2  ;;  %1919 = vpow2.f32 %v1301_v61 }
 0x10b   :  { %v1902_v9 = vpop.eup %1901  ;;  %1921 = vrcp.f32 %v496_v3  ;;  %1713 = vmatprep.mubr.f32.mxu1 %v1900_v5  ;;  %v1755_v5 = vpop.f32.mrb[16].mxu0 }
 0x10c   :  { %v1904_v13 = vpop.eup %1903  ;;  %1923 = vrcp.f32 %v495_v7  ;;  %1714 = vmatmul.mubr.f32.gmra.mrb[24].mxu1 %v1902_v9  ;;  %v1046_v7 = vpop.f32.mrb[17].mxu0  ;;  %1206 = vst [vmem:[%s2575_s6 + $0x8] sm:$0xff] %v1755_v5 }
 0x10d   :  { %v1906_v15 = vpop.eup %1905  ;;  %1925 = vpow2.f32 %v1300_v4  ;;  %v500_v25 = vadd.f32 1.0, %v1904_v13  ;;  %1205 = vst [vmem:[%s2575_s6] sm:$0xff] %v1046_v7 }
 0x10e   :  { %v1908_v16 = vpop.eup %1907  ;;  %1927 = vrcp.f32 %v499_v8  ;;  %v502_v35 = vadd.f32 1.0, %v1906_v15  ;;  %v1758_v8 = vpop.f32.mrb[18].mxu0 }
 0x10f   :  { %v1910_v18 = vpop.eup %1909  ;;  %1929 = vpow2.f32 %v1302_v44  ;;  %1716 = vmatprep.mubr.f32.mxu1 %v1908_v16  ;;  %1208 = vst [vmem:[%s2575_s6 + $0x18] sm:$0xff] %v1758_v8  ;;  %v1056_v9 = vpop.f32.mrb[19].mxu0 }
 0x110   :  { %v1912_v21 = vpop.eup %1911  ;;  %1931 = vpow2.f32 %v1303_v42  ;;  %1717 = vmatmul.mubr.f32.gmra.mrb[26].mxu1 %v1910_v18  ;;  %1207 = vst [vmem:[%s2575_s6 + $0x10] sm:$0xff] %v1056_v9  ;;  %v1761_v44 = vpop.f32.mrb[20].mxu0 }
 0x111   :  { %v1914_v24 = vpop.eup %1913  ;;  %1933 = vpow2.f32 %v1304_v57  ;;  %1210 = vst [vmem:[%s2575_s6 + $0x28] sm:$0xff] %v1761_v44  ;;  %v1066_v12 = vpop.f32.mrb[21].mxu0 }
 0x112   :  { %v1916_v27 = vpop.eup %1915  ;;  %1935 = vrcp.f32 %v501_v17  ;;  %1719 = vmatprep.mubr.f32.mxu1 %v1914_v24  ;;  %1209 = vst [vmem:[%s2575_s6 + $0x20] sm:$0xff] %v1066_v12  ;;  %v1764_v13 = vpop.f32.mrb[22].mxu0 }
 0x113   :  { %v1918_v28 = vpop.eup %1917  ;;  %1937 = vpow2.f32 %v1306_v19  ;;  %1212 = vst [vmem:[%s2575_s6 + $0x38] sm:$0xff] %v1764_v13  ;;  %v1076_v42 = vpop.f32.mrb[23].mxu0 }
 0x114   :  { %v1920_v26 = vpop.eup %1919  ;;  %1939 = vpow2.f32 %v1305_v23  ;;  %1720 = vmatmul.mubr.f32.gmra.mrb[28].mxu1 %v1918_v28  ;;  %1211 = vst [vmem:[%s2575_s6 + $0x30] sm:$0xff] %v1076_v42  ;;  %v1767_v14 = vpop.f32.mrb[24].mxu0 }
 0x115   :  { %v1922_v34 = vpop.eup %1921  ;;  %1941 = vrcp.f32 %v500_v25  ;;  %v504_v62 = vadd.f32 1.0, %v1920_v26  ;;  %1214 = vst [vmem:[%s2575_s6 + $0x48] sm:$0xff] %v1767_v14  ;;  %v1086_v15 = vpop.f32.mrb[25].mxu0 }
 0x116   :  { %v1924_v6 = vpop.eup %1923  ;;  %1943 = vpow2.f32 %v1308_v31  ;;  %1213 = vst [vmem:[%s2575_s6 + $0x40] sm:$0xff] %v1086_v15  ;;  %v1770_v57 = vpop.f32.mrb[26].mxu0 }
 0x117   :  { %v1926_v36 = vpop.eup %1925  ;;  %1722 = vmatprep.mubr.f32.mxu1 %v1924_v6  ;;  %1945 = vpow2.f32 %v1307_v33  ;;  %1216 = vst [vmem:[%s2575_s6 + $0x58] sm:$0xff] %v1770_v57  ;;  %v1096_v16 = vpop.f32.mrb[27].mxu0 }
 0x118   :  { %v1928_v38 = vpop.eup %1927  ;;  %v503_v39 = vadd.f32 1.0, %v1926_v36  ;;  %1723 = vmatmul.mubr.f32.gmra.mrb[30].mxu1 %v1922_v34  ;;  %1947 = vrcp.f32 %v502_v35  ;;  %1215 = vst [vmem:[%s2575_s6 + $0x50] sm:$0xff] %v1096_v16  ;;  %v1773_v17 = vpop.f32.mrb[28].mxu0 }
 0x119   :  { %v1930_v40 = vpop.eup %1929  ;;  %1725 = vmatprep.mubr.f32.mxu1 %v1916_v27  ;;  %1218 = vst [vmem:[%s2575_s6 + $0x68] sm:$0xff] %v1773_v17  ;;  %v1106_v18 = vpop.f32.mrb[29].mxu0 }
 0x11a   :  { %v1932_v22 = vpop.eup %1931  ;;  %1949 = vrcp.f32 %v503_v39  ;;  %v505_v41 = vadd.f32 1.0, %v1930_v40  ;;  %1217 = vst [vmem:[%s2575_s6 + $0x60] sm:$0xff] %v1106_v18  ;;  %v1776_v19 = vpop.f32.mrb[30].mxu0 }
 0x11b   :  { %v1934_v43 = vpop.eup %1933  ;;  %1951 = vpow2.f32 %v1309_v37  ;;  %v506_v20 = vadd.f32 1.0, %v1932_v22  ;;  %1220 = vst [vmem:[%s2575_s6 + $0x78] sm:$0xff] %v1776_v19  ;;  %v1116_v11 = vpop.f32.mrb[31].mxu0 }
 0x11c   :  { %v1936_v10 = vpop.eup %1935  ;;  %1953 = vrcp.f32 %v505_v41  ;;  %v507_v45 = vadd.f32 1.0, %v1934_v43  ;;  %1726 = vmatmul.mubr.f32.gmra.mrb[32].mxu1 %v1912_v21  ;;  %1219 = vst [vmem:[%s2575_s6 + $0x70] sm:$0xff] %v1116_v11  ;;  %v1779_v21 = vpop.f32.mrb[32].mxu0 }
 0x11d   :  { %v1938_v46 = vpop.eup %1937  ;;  %1955 = vrcp.f32 %v504_v62  ;;  %1728 = vmatprep.mubr.f32.mxu1 %v1928_v38  ;;  %1222 = vst [vmem:[%s2575_s6 + $0x88] sm:$0xff] %v1779_v21  ;;  %v1126_v23 = vpop.f32.mrb[33].mxu0 }
 0x11e   :  { %v1940_v47 = vpop.eup %1939  ;;  %1957 = vrcp.f32 %v507_v45  ;;  %v509_v49 = vadd.f32 1.0, %v1938_v46  ;;  %1221 = vst [vmem:[%s2575_s6 + $0x80] sm:$0xff] %v1126_v23 }
 0x11f   :  { %v1942_v48 = vpop.eup %1941  ;;  %1959 = vrcp.f32 %v506_v20  ;;  %v508_v51 = vadd.f32 1.0, %v1940_v47  ;;  %v1782_v54 = vpop.f32.mrb[34].mxu0 }
 0x120   :  { %1729 = vmatmul.mubr.f32.gmra.mrb[34].mxu1 %v1942_v48  ;;  %v1944_v50 = vpop.eup %1943  ;;  %1961 = vrcp.f32 %v509_v49  ;;  %1224 = vst [vmem:[%s2575_s6 + $0x98] sm:$0xff] %v1782_v54  ;;  %v1136_v24 = vpop.f32.mrb[35].mxu0 }
 0x121   :  { %1731 = vmatprep.mubr.f32.mxu1 %v1936_v10  ;;  %v1946_v52 = vpop.eup %1945  ;;  %v511_v56 = vadd.f32 1.0, %v1944_v50  ;;  %1963 = vrcp.f32 %v508_v51  ;;  %1223 = vst [vmem:[%s2575_s6 + $0x90] sm:$0xff] %v1136_v24 }
 0x122   :  { %v1948_v53 = vpop.eup %1947  ;;  %v510_v59 = vadd.f32 1.0, %v1946_v52 }
 0x123   :  { %1965 = vrcp.f32 %v511_v56  ;;  %v1785_v25 = vpop.f32.mrb[36].mxu0 }
 0x124   :  { %v1950_v55 = vpop.eup %1949  ;;  %1732 = vmatmul.mubr.f32.gmra.mrb[36].mxu1 %v1948_v53  ;;  %1967 = vrcp.f32 %v510_v59  ;;  %1226 = vst [vmem:[%s2575_s6 + $0xa8] sm:$0xff] %v1785_v25  ;;  %v1146_v27 = vpop.f32.mrb[37].mxu0 }
 0x125   :  { %v1952_v58 = vpop.eup %1951  ;;  %1734 = vmatprep.mubr.f32.mxu1 %v1950_v55  ;;  %1225 = vst [vmem:[%s2575_s6 + $0xa0] sm:$0xff] %v1146_v27 }
 0x126   :  { %v1954_v60 = vpop.eup %1953  ;;  %v512_v63 = vadd.f32 1.0, %v1952_v58 }
 0x127   :  { %v1956_v61 = vpop.eup %1955  ;;  %v1788_v28 = vpop.f32.mrb[38].mxu0 }
 0x128   :  { %1735 = vmatmul.mubr.f32.gmra.mrb[38].mxu1 %v1956_v61  ;;  %v1958_v30 = vpop.eup %1957  ;;  %1969 = vrcp.f32 %v512_v63  ;;  %1228 = vst [vmem:[%s2575_s6 + $0xb8] sm:$0xff] %v1788_v28  ;;  %v1156_v29 = vpop.f32.mrb[39].mxu0 }
 0x129   :  { %1737 = vmatprep.mubr.f32.mxu1 %v1954_v60  ;;  %v1960_v0 = vpop.eup %1959  ;;  %1227 = vst [vmem:[%s2575_s6 + $0xb0] sm:$0xff] %v1156_v29 }
 0x12a   :  { %v1962_v1 = vpop.eup %1961 }
 0x12b   :  { %v1964_v2 = vpop.eup %1963  ;;  %v1791_v31 = vpop.f32.mrb[40].mxu0 }
 0x12c   :  { %1738 = vmatmul.mubr.f32.gmra.mrb[40].mxu1 %v1960_v0  ;;  %1230 = vst [vmem:[%s2575_s6 + $0xc8] sm:$0xff] %v1791_v31  ;;  %v1166_v26 = vpop.f32.mrb[41].mxu0 }
 0x12d   :  { %1740 = vmatprep.mubr.f32.mxu1 %v1958_v30  ;;  %v1966_v3 = vpop.eup %1965  ;;  %1229 = vst [vmem:[%s2575_s6 + $0xc0] sm:$0xff] %v1166_v26 }
 0x12e   :  { %v1968_v4 = vpop.eup %1967 }
 0x12f   :  { %v1794_v33 = vpop.f32.mrb[42].mxu0 }
 0x130   :  { %1741 = vmatmul.mubr.f32.gmra.mrb[42].mxu1 %v1964_v2  ;;  %1232 = vst [vmem:[%s2575_s6 + $0xd8] sm:$0xff] %v1794_v33  ;;  %v1176_v34 = vpop.f32.mrb[43].mxu0 }
 0x131   :  { %1743 = vmatprep.mubr.f32.mxu1 %v1962_v1  ;;  %1231 = vst [vmem:[%s2575_s6 + $0xd0] sm:$0xff] %v1176_v34 }
 0x132   :  { %v1970_v32 = vpop.eup %1969 }
 0x133   :  { %v1797_v35 = vpop.f32.mrb[44].mxu0 }
 0x134   :  { %1744 = vmatmul.mubr.f32.gmra.mrb[44].mxu1 %v1968_v4  ;;  %1234 = vst [vmem:[%s2575_s6 + $0xe8] sm:$0xff] %v1797_v35  ;;  %v1186_v6 = vpop.f32.mrb[45].mxu0 }
 0x135   :  { %1746 = vmatprep.mubr.f32.mxu1 %v1966_v3  ;;  %1233 = vst [vmem:[%s2575_s6 + $0xe0] sm:$0xff] %v1186_v6 }
 0x137   :  { %v1800_v36 = vpop.f32.mrb[46].mxu0 }
 0x138   :  { %1747 = vmatmul.mubr.f32.gmra.mrb[46].mxu1 %v1970_v32  ;;  %1236 = vst [vmem:[%s2575_s6 + $0xf8] sm:$0xff] %v1800_v36  ;;  %v1196_v37 = vpop.f32.mrb[47].mxu0 }
 0x139   :  { %1235 = vst [vmem:[%s2575_s6 + $0xf0] sm:$0xff] %v1196_v37 }
 0x1cd   :  { %v1703_v38 = vpop.f32.mrb[16].mxu1 }
 0x1ce   :  { %v659_v39 = vpop.f32.mrb[17].mxu1 }
 0x1cf   :  { %v1409_v40 = vpack.c.bf16 %v1703_v38, %v659_v39 }
 0x1d1   :  { %1410 = vst [vmem:[%s2576_s5] sm:$0xff] %v1409_v40   ;;  %v1706_v62 = vpop.f32.mrb[18].mxu1 }
 0x1d2   :  { %v669_v22 = vpop.f32.mrb[19].mxu1 }
 0x1d3   :  { %v1414_v41 = vpack.c.bf16 %v1706_v62, %v669_v22 }
 0x1d5   :  { %1486 = vst [vmem:[%s2576_s5 + $0x8] sm:$0xff] %v1414_v41   ;;  %v1709_v43 = vpop.f32.mrb[20].mxu1 }
 0x1d6   :  { %v679_v10 = vpop.f32.mrb[21].mxu1 }
 0x1d7   :  { %v1419_v45 = vpack.c.bf16 %v1709_v43, %v679_v10 }
 0x1d9   :  { %1487 = vst [vmem:[%s2576_s5 + $0x10] sm:$0xff] %v1419_v45  }
 0x1db   :  { %v1712_v46 = vpop.f32.mrb[22].mxu1 }
 0x1dc   :  { %v689_v20 = vpop.f32.mrb[23].mxu1 }
 0x1dd   :  { %v1424_v47 = vpack.c.bf16 %v1712_v46, %v689_v20 }
 0x1df   :  { %1488 = vst [vmem:[%s2576_s5 + $0x18] sm:$0xff] %v1424_v47   ;;  %v1715_v48 = vpop.f32.mrb[24].mxu1 }
 0x1e0   :  { %v699_v49 = vpop.f32.mrb[25].mxu1 }
 0x1e1   :  { %v1429_v50 = vpack.c.bf16 %v1715_v48, %v699_v49 }
 0x1e3   :  { %1489 = vst [vmem:[%s2576_s5 + $0x20] sm:$0xff] %v1429_v50   ;;  %v1718_v51 = vpop.f32.mrb[26].mxu1 }
 0x1e4   :  { %v709_v52 = vpop.f32.mrb[27].mxu1 }
 0x1e5   :  { %v1434_v53 = vpack.c.bf16 %v1718_v51, %v709_v52 }
 0x1e7   :  { %1490 = vst [vmem:[%s2576_s5 + $0x28] sm:$0xff] %v1434_v53   ;;  %v1721_v55 = vpop.f32.mrb[28].mxu1 }
 0x1e8   :  { %v719_v56 = vpop.f32.mrb[29].mxu1 }
 0x1e9   :  { %v1439_v58 = vpack.c.bf16 %v1721_v55, %v719_v56 }
 0x1eb   :  { %1491 = vst [vmem:[%s2576_s5 + $0x30] sm:$0xff] %v1439_v58   ;;  %v1724_v59 = vpop.f32.mrb[30].mxu1 }
 0x1ec   :  { %v729_v60 = vpop.f32.mrb[31].mxu1 }
 0x1ed   :  { %v1444_v61 = vpack.c.bf16 %v1724_v59, %v729_v60 }
 0x1ef   :  { %1492 = vst [vmem:[%s2576_s5 + $0x38] sm:$0xff] %v1444_v61   ;;  %v1727_v63 = vpop.f32.mrb[32].mxu1 }
 0x1f0   :  { %v739_v30 = vpop.f32.mrb[33].mxu1 }
 0x1f1   :  { %v1449_v0 = vpack.c.bf16 %v1727_v63, %v739_v30 }
 0x1f3   :  { %1493 = vst [vmem:[%s2576_s5 + $0x40] sm:$0xff] %v1449_v0   ;;  %v1730_v1 = vpop.f32.mrb[34].mxu1 }
 0x1f4   :  { %v749_v2 = vpop.f32.mrb[35].mxu1 }
 0x1f5   :  { %v1454_v3 = vpack.c.bf16 %v1730_v1, %v749_v2 }
 0x1f7   :  { %1494 = vst [vmem:[%s2576_s5 + $0x48] sm:$0xff] %v1454_v3   ;;  %v1733_v4 = vpop.f32.mrb[36].mxu1 }
 0x1f8   :  { %v759_v32 = vpop.f32.mrb[37].mxu1 }
 0x1f9   :  { %v1459_v5 = vpack.c.bf16 %v1733_v4, %v759_v32 }
 0x1fb   :  { %1495 = vst [vmem:[%s2576_s5 + $0x50] sm:$0xff] %v1459_v5   ;;  %v1736_v7 = vpop.f32.mrb[38].mxu1 }
 0x1fc   :  { %v769_v8 = vpop.f32.mrb[39].mxu1 }
 0x1fd   :  { %v1464_v9 = vpack.c.bf16 %v1736_v7, %v769_v8 }
 0x1ff   :  { %1496 = vst [vmem:[%s2576_s5 + $0x58] sm:$0xff] %v1464_v9   ;;  %v1739_v44 = vpop.f32.mrb[40].mxu1 }
 0x200   :  { %v779_v12 = vpop.f32.mrb[41].mxu1 }
 0x201   :  { %v1469_v13 = vpack.c.bf16 %v1739_v44, %v779_v12 }
 0x203   :  { %1497 = vst [vmem:[%s2576_s5 + $0x60] sm:$0xff] %v1469_v13   ;;  %v1742_v42 = vpop.f32.mrb[42].mxu1 }
 0x204   :  { %v789_v14 = vpop.f32.mrb[43].mxu1 }
 0x205   :  { %v1474_v15 = vpack.c.bf16 %v1742_v42, %v789_v14 }
 0x207   :  { %1498 = vst [vmem:[%s2576_s5 + $0x68] sm:$0xff] %v1474_v15   ;;  %v1745_v57 = vpop.f32.mrb[44].mxu1 }
 0x208   :  { %v799_v16 = vpop.f32.mrb[45].mxu1 }
 0x209   :  { %v1479_v17 = vpack.c.bf16 %v1745_v57, %v799_v16 }
 0x20b   :  { %1499 = vst [vmem:[%s2576_s5 + $0x70] sm:$0xff] %v1479_v17   ;;  %v1748_v18 = vpop.f32.mrb[46].mxu1 }
 0x20c   :  { %v809_v19 = vpop.f32.mrb[47].mxu1 }
 0x20d   :  { %v1484_v11 = vpack.c.bf16 %v1748_v18, %v809_v19 }
 0x20f   :  { %1500 = vst [vmem:[%s2576_s5 + $0x78] sm:$0xff] %v1484_v11  }

</bundles_post_ra>
